<compile_context>
chip_gen: v6e
topology: v6e:2x2x1
jax: 0.10.0
libtpu: 0.0.40
codegen_flags: <defaults>
</compile_context>

<pallas_src>
import functools
import math

import jax
import jax.numpy as jnp
from jax.experimental import pallas as pl
from jax.experimental.pallas import tpu as pltpu

EPS = 1.1920929e-07  # float32 machine eps; matches F.rms_norm(eps=None) default


def _rms_norm(x):
    ms = jnp.mean(x * x, axis=-1, keepdims=True)
    return x * jax.lax.rsqrt(ms + EPS)


def _gelu_exact(x):
    # F.gelu default (approximate='none'): 0.5 * x * (1 + erf(x / sqrt(2)))
    return 0.5 * x * (1.0 + jax.lax.erf(x * (1.0 / math.sqrt(2.0))))


def _vmem_limit(block_bytes, scratch_bytes=0):
    """Scoped-VMEM request: double-buffered blocks + scratch + headroom, capped
    at ~85% of this generation's physical VMEM (so v7x's 64 MiB is respected)."""
    need = 2 * block_bytes + scratch_bytes + (2 << 20)
    try:
        cap = int(0.85 * pltpu.get_tpu_info().vmem_capacity_bytes)
    except Exception:
        cap = 56 * 2**20          # safe fallback for v5e / v6e / v7x
    return int(min(cap, max(16 * 2**20, need)))


# ---------------------------------------------------------------------------
# Kernel 1: rms_norm + fused q/qs/k/ks/v projection + RoPE,
# tiled over (seq tile, batch)  (batch innermost so cos/sin are not re-DMA'd).
# ---------------------------------------------------------------------------
def qkv_rope_kernel(x_ref, w_ref, *rest, rope, C):
    if rope:
        cos_ref, sin_ref, q_ref, k_ref, v_ref = rest
    else:
        q_ref, k_ref, v_ref = rest
    x = x_ref[0].astype(jnp.float32)                       # (tt, C)
    xn = _rms_norm(x).astype(w_ref.dtype)
    # One fused wide-N MXU matmul; columns are [q | q_sw | k | k_sw | v] (rope)
    # or [q | k | v] (no rope).  Slices below are full-128-lane blocks.
    qkv = jnp.dot(xn, w_ref[...], preferred_element_type=jnp.float32)
    if rope:
        q, qs = qkv[:, 0:C], qkv[:, C:2 * C]
        k, ks = qkv[:, 2 * C:3 * C], qkv[:, 3 * C:4 * C]
        v = qkv[:, 4 * C:5 * C]
        # q_sw / k_sw are the half-swapped-within-head versions, obtained via
        # column-permuted weight copies -> RoPE is pure full-width VPU FMAs.
        cos = cos_ref[...].astype(jnp.float32)             # (tt, C)
        sin = sin_ref[...].astype(jnp.float32)             # sign baked in
        q = q * cos + qs * sin
        k = k * cos + ks * sin
    else:
        q, k, v = qkv[:, 0:C], qkv[:, C:2 * C], qkv[:, 2 * C:3 * C]
    q_ref[0] = q.astype(q_ref.dtype)
    k_ref[0] = k.astype(k_ref.dtype)
    v_ref[0] = v.astype(v_ref.dtype)


# ---------------------------------------------------------------------------
# Kernel 2: flash attention (online softmax over kv tiles) + out projection +
# residual + rms_norm + MLP + residual, gridded over (batch, q tile, kv tile).
# ---------------------------------------------------------------------------
def attn_mlp_kernel(x_ref, q_ref, k_ref, v_ref, wo_ref, wfc_ref, wp_ref,
                    o_ref, acc_scr, m_scr, l_scr, *,
                    n_head, head_dim, n_layer, causal, tq, tk):
    qi = pl.program_id(1)
    ki = pl.program_id(2)
    nk = pl.num_programs(2)
    scale = 1.0 / head_dim                 # PyTorch passes scale=1/q.shape[-1]
    a = (2.0 * n_layer - 1.0) / (2.0 * n_layer)
    b = 1.0 / (2.0 * n_layer)

    @pl.when(ki == 0)
    def _init():
        acc_scr[...] = jnp.zeros_like(acc_scr)
        m_scr[...] = jnp.full_like(m_scr, -jnp.inf)
        l_scr[...] = jnp.zeros_like(l_scr)

    q_start = qi * tq
    k_start = ki * tk

    def _broadcast_heads(cols):
        # [(tq, 1)] * n_head  ->  (tq, n_head*head_dim): per-head scalar column
        # replicated across that head's lanes (full-lane-width, no masked store).
        return jnp.concatenate(
            [jnp.broadcast_to(c, (tq, head_dim)) for c in cols], axis=-1)

    def _online_softmax_update(masked):
        q = q_ref[0]                       # (tq, C) compute dtype
        k = k_ref[0]                       # (tk, C)
        v = v_ref[0]                       # (tk, C)
        if masked:
            # per-tile mask from program_id offsets (no (T, T) materialization)
            row = q_start + jax.lax.broadcasted_iota(jnp.int32, (tq, tk), 0)
            col = k_start + jax.lax.broadcasted_iota(jnp.int32, (tq, tk), 1)
            mask = row >= col
        alphas, pvs = [], []
        # Static unroll over heads (n_head small here); for many-head configs
        # switch to lax.fori_loop over pl.ds(h*head_dim, head_dim) slices.
        for h in range(n_head):
            lo = h * head_dim
            qh = q[:, lo:lo + head_dim]
            kh = k[:, lo:lo + head_dim]
            vh = v[:, lo:lo + head_dim]
            s = jax.lax.dot_general(
                qh, kh, (((1,), (1,)), ((), ())),
                preferred_element_type=jnp.float32) * scale        # (tq, tk)
            if masked:
                s = jnp.where(mask, s, -jnp.inf)
            m_old = m_scr[h]                                        # (tq, 1)
            m_new = jnp.maximum(m_old, jnp.max(s, axis=-1, keepdims=True))
            alpha = jnp.exp(m_old - m_new)
            p = jnp.exp(s - m_new)
            l_scr[h] = alpha * l_scr[h] + jnp.sum(p, axis=-1, keepdims=True)
            m_scr[h] = m_new
            pvs.append(jnp.dot(p.astype(v.dtype), vh,
                               preferred_element_type=jnp.float32))  # (tq, hd)
            alphas.append(alpha)
        # Single full-lane-width accumulator update per kv step
        # (no per-head masked partial-lane read-modify-writes of scratch).
        alpha_full = _broadcast_heads(alphas)                       # (tq, C)
        pv_full = jnp.concatenate(pvs, axis=-1)                     # (tq, C)
        acc_scr[...] = alpha_full * acc_scr[...] + pv_full

    if causal:
        # Tiles fully above the diagonal are skipped here AND their DMA is
        # clamped away in the k/v index_maps.  Only the diagonal-crossing tile
        # pays for the mask; fully-below-diagonal tiles take the mask-free path.
        below_diag = k_start + tk - 1 <= q_start
        crossing = jnp.logical_and(k_start <= q_start + tq - 1,
                                   jnp.logical_not(below_diag))
        pl.when(below_diag)(lambda: _online_softmax_update(False))
        pl.when(crossing)(lambda: _online_softmax_update(True))
    else:
        _online_softmax_update(False)

    @pl.when(ki == nk - 1)
    def _finalize():
        # exact per-head softmax denominators, broadcast across head lanes
        recip_full = _broadcast_heads([1.0 / l_scr[h] for h in range(n_head)])
        y_att = acc_scr[...] * recip_full                           # (tq, C)
        x = x_ref[0].astype(jnp.float32)
        y = jnp.dot(y_att.astype(wo_ref.dtype), wo_ref[...],
                    preferred_element_type=jnp.float32)             # K = C
        x1 = a * x + b * y
        xn2 = _rms_norm(x1).astype(wfc_ref.dtype)
        h1 = _gelu_exact(jnp.dot(xn2, wfc_ref[...],
                                 preferred_element_type=jnp.float32))
        h2 = jnp.dot(h1.astype(wp_ref.dtype), wp_ref[...],
                     preferred_element_type=jnp.float32)
        o_ref[0] = (a * x1 + b * h2).astype(o_ref.dtype)


# ---------------------------------------------------------------------------
# Wrapper.  Linear weights are pre-transposed to (in, out) so matmuls are x @ W.
# ---------------------------------------------------------------------------
def block_forward(x, params, *, n_head, n_layer, causal=True, rope=True,
                  rope_base=100, compute_dtype=jnp.bfloat16, seq_tile=256):
    B, T, C = x.shape
    head_dim = C // n_head
    hd2 = head_dim // 2
    assert C % n_head == 0 and head_dim % 2 == 0

    tq = tk = min(seq_tile, T)      # kernel-2 tiles (big fills the MXU N dim)
    tt = min(128, T)                # kernel-1 row tile
    assert T % tq == 0 and T % tt == 0, "T must be a multiple of the tile sizes"
    assert (tq % 8 == 0 or tq == T) and (tt % 8 == 0 or tt == T)

    wq, wk, wv, wo, wfc, wp = params
    cdt = jnp.dtype(compute_dtype)

    # Column permutation implementing rotate-half within each head, folded into
    # extra copies of wq / wk so RoPE needs no lane rolls/concats in-kernel.
    col = jnp.arange(C)
    d = col % head_dim
    swap_cols = col - d + jnp.where(d < hd2, d + hd2, d - hd2)

    if rope:
        w_all = jnp.concatenate(
            [wq, wq[:, swap_cols], wk, wk[:, swap_cols], wv], axis=1).astype(cdt)
        nw = 5
    else:
        w_all = jnp.concatenate([wq, wk, wv], axis=1).astype(cdt)
        nw = 3
    wo_c, wfc_c, wp_c = wo.astype(cdt), wfc.astype(cdt), wp.astype(cdt)

    wbytes = cdt.itemsize
    fbytes = 4

    # ---------------- kernel 1: rms_norm + fused qkv (+ RoPE) ----------------
    nt = T // tt
    k1_in_specs = [
        pl.BlockSpec((1, tt, C), lambda t_, b_: (b_, t_, 0)),        # x
        # constant-index weight block (double-buffered by default; at large C
        # consider pipeline_mode=pl.Buffered(1) to single-buffer it)
        pl.BlockSpec((C, nw * C), lambda t_, b_: (0, 0)),            # w_all
    ]
    k1_inputs = [x, w_all]
    if rope:
        # Full-width (T, C) RoPE tables in compute dtype: cos repeated over both
        # halves of every head; sin sign (+ first half / - second half) baked in.
        inv_freq = 1.0 / (rope_base ** (jnp.arange(0, head_dim, 2,
                                                   dtype=jnp.float32) / head_dim))
        freqs = jnp.outer(jnp.arange(T, dtype=jnp.float32), inv_freq)
        cos_h = jnp.concatenate([jnp.cos(freqs), jnp.cos(freqs)], axis=-1)
        sin_h = jnp.concatenate([jnp.sin(freqs), -jnp.sin(freqs)], axis=-1)
        cosC = jnp.tile(cos_h, (1, n_head)).astype(cdt)              # (T, C)
        sinC = jnp.tile(sin_h, (1, n_head)).astype(cdt)
        k1_in_specs += [pl.BlockSpec((tt, C), lambda t_, b_: (t_, 0)),
                        pl.BlockSpec((tt, C), lambda t_, b_: (t_, 0))]
        k1_inputs += [cosC, sinC]

    k1_block_bytes = (tt * C * fbytes + nw * C * C * wbytes
                      + (2 * tt * C * wbytes if rope else 0)
                      + 3 * tt * C * wbytes)
    q_rot, k_rot, v_all = pl.pallas_call(
        functools.partial(qkv_rope_kernel, rope=rope, C=C),
        out_shape=(jax.ShapeDtypeStruct((B, T, C), cdt),) * 3,
        grid=(nt, B),        # batch innermost: cos/sin blocks are not re-DMA'd
        in_specs=k1_in_specs,
        out_specs=(pl.BlockSpec((1, tt, C), lambda t_, b_: (b_, t_, 0)),) * 3,
        compiler_params=pltpu.CompilerParams(
            dimension_semantics=("parallel", "parallel"),
            vmem_limit_bytes=_vmem_limit(k1_block_bytes)),
    )(*k1_inputs)

    # ---- kernel 2: flash attention + out proj + residual + MLP + residual ----
    nq, nkv = T // tq, T // tk

    if causal:
        # kv tiles that the pl.when compute-skip never reads map to the last
        # needed block index, so Pallas issues no DMA for them.
        def kv_index_map(b_, q_, k_):
            return (b_, jnp.minimum(k_, (q_ * tq + tq - 1) // tk), 0)
    else:
        def kv_index_map(b_, q_, k_):
            return (b_, k_, 0)

    k2_block_bytes = (tq * C * fbytes + tq * C * wbytes + 2 * tk * C * wbytes
                      + (C * C + C * 4 * C + 4 * C * C) * wbytes
                      + tq * C * fbytes)
    k2_scratch_bytes = tq * C * fbytes + 2 * n_head * tq * 128 * fbytes
    out = pl.pallas_call(
        functools.partial(attn_mlp_kernel, n_head=n_head, head_dim=head_dim,
                          n_layer=n_layer, causal=causal, tq=tq, tk=tk),
        out_shape=jax.ShapeDtypeStruct((B, T, C), x.dtype),
        grid=(B, nq, nkv),
        in_specs=[
            pl.BlockSpec((1, tq, C), lambda b_, q_, k_: (b_, q_, 0)),   # x
            pl.BlockSpec((1, tq, C), lambda b_, q_, k_: (b_, q_, 0)),   # q
            pl.BlockSpec((1, tk, C), kv_index_map),                     # k
            pl.BlockSpec((1, tk, C), kv_index_map),                     # v
            pl.BlockSpec((C, C), lambda b_, q_, k_: (0, 0)),            # wo
            pl.BlockSpec((C, 4 * C), lambda b_, q_, k_: (0, 0)),        # wfc
            pl.BlockSpec((4 * C, C), lambda b_, q_, k_: (0, 0)),        # wp
        ],
        out_specs=pl.BlockSpec((1, tq, C), lambda b_, q_, k_: (b_, q_, 0)),
        scratch_shapes=[
            pltpu.VMEM((tq, C), jnp.float32),            # attention accumulator
            pltpu.VMEM((n_head, tq, 1), jnp.float32),    # running max per head
            pltpu.VMEM((n_head, tq, 1), jnp.float32),    # running denom per head
        ],
        compiler_params=pltpu.CompilerParams(
            dimension_semantics=("parallel", "parallel", "arbitrary"),
            vmem_limit_bytes=_vmem_limit(k2_block_bytes, k2_scratch_bytes)),
    )(x, q_rot, k_rot, v_all, wo_c, wfc_c, wp_c)
    return out


# ------------- pure-JAX reference (mirrors the PyTorch semantics) -------------
def block_ref(x, params, *, n_head, n_layer, causal, rope, rope_base):
    B, T, C = x.shape
    hd = C // n_head
    wq, wk, wv, wo, wfc, wp = params
    a = (2 * n_layer - 1) / (2 * n_layer)
    b = 1.0 / (2 * n_layer)

    def rms(z):
        return z * jax.lax.rsqrt(jnp.mean(z * z, -1, keepdims=True) + EPS)

    xn = rms(x)
    q = (xn @ wq).reshape(B, T, n_head, hd)
    k = (xn @ wk).reshape(B, T, n_head, hd)
    v = (xn @ wv).reshape(B, T, n_head, hd)
    if rope:
        inv = 1.0 / (rope_base ** (jnp.arange(0, hd, 2, dtype=jnp.float32) / hd))
        fr = jnp.outer(jnp.arange(T, dtype=jnp.float32), inv)
        cosr = jnp.cos(fr)[None, :, None, :]
        sinr = jnp.sin(fr)[None, :, None, :]

        def rot(z):
            z1, z2 = z[..., :hd // 2], z[..., hd // 2:]
            return jnp.concatenate([z1 * cosr + z2 * sinr,
                                    -z1 * sinr + z2 * cosr], -1)
        q, k = rot(q), rot(k)
    s = jnp.einsum('bthd,bshd->bhts', q, k) * (1.0 / hd)
    if causal:
        mask = jnp.tril(jnp.ones((T, T), bool))
        s = jnp.where(mask, s, -jnp.inf)
    p = jax.nn.softmax(s, -1)
    y = jnp.einsum('bhts,bshd->bthd', p, v).reshape(B, T, C) @ wo
    x1 = a * x + b * y
    h = jax.nn.gelu(rms(x1) @ wfc, approximate=False)
    return a * x1 + b * (h @ wp)


if __name__ == "__main__":
    B, T, C = 2, 256, 128
    n_head, n_layer = 4, 3
    causal, rope, rope_base = True, True, 100

    key = jax.random.PRNGKey(0)
    kx, kq, kk, kv, ko, kf, kp = jax.random.split(key, 7)
    x = jax.random.normal(kx, (B, T, C), dtype=jnp.float32)

    # TODO(synk): `orthogonalize()` source is not provided; using deterministic
    # scaled-normal init instead (forward semantics are weight-value agnostic).
    def init(k_, fan_in, fan_out):
        return (jax.random.normal(k_, (fan_in, fan_out), dtype=jnp.float32)
                / math.sqrt(fan_in))

    params = (init(kq, C, C), init(kk, C, C), init(kv, C, C), init(ko, C, C),
              init(kf, C, 4 * C), init(kp, 4 * C, C))

    ref = block_ref(x, params, n_head=n_head, n_layer=n_layer,
                    causal=causal, rope=rope, rope_base=rope_base)

    # f32 compute path, 128-tiles: exercises multi-kv-tile online softmax,
    # the causal compute skip, and the clamped (no-DMA) kv index_map.
    out_f32 = jax.block_until_ready(block_forward(
        x, params, n_head=n_head, n_layer=n_layer, causal=causal, rope=rope,
        rope_base=rope_base, compute_dtype=jnp.float32, seq_tile=128))
    assert out_f32.shape == (B, T, C) and out_f32.dtype == jnp.float32
    err32 = jnp.max(jnp.abs(out_f32 - ref))
    assert jnp.allclose(out_f32, ref, atol=1e-3, rtol=1e-3), (
        f"f32 max abs err {err32}")

    # bf16 compute path with the default 256-wide tiles (MXU-friendly defaults).
    out_bf16 = jax.block_until_ready(block_forward(
        x, params, n_head=n_head, n_layer=n_layer, causal=causal, rope=rope,
        rope_base=rope_base, compute_dtype=jnp.bfloat16))
    assert out_bf16.shape == (B, T, C) and out_bf16.dtype == jnp.float32
    err16 = jnp.max(jnp.abs(out_bf16 - ref))
    assert jnp.allclose(out_bf16, ref, atol=5e-2, rtol=5e-2), (
        f"bf16 max abs err {err16}")

    print("KERNEL_OK")
</pallas_src>

<mosaic_0001>
module attributes {stable_mosaic.version = 11 : i64} {
  func.func @qkv_rope_kernel(%arg0: i32, %arg1: i32, %arg2: memref<1x128x128xf32, #tpu.memory_space<vmem>>, %arg3: memref<128x640xf32, #tpu.memory_space<vmem>>, %arg4: memref<128x128xf32, #tpu.memory_space<vmem>>, %arg5: memref<128x128xf32, #tpu.memory_space<vmem>>, %arg6: memref<1x128x128xf32, #tpu.memory_space<vmem>>, %arg7: memref<1x128x128xf32, #tpu.memory_space<vmem>>, %arg8: memref<1x128x128xf32, #tpu.memory_space<vmem>>) attributes {dimension_semantics = [#tpu.dimension_semantics<parallel>, #tpu.dimension_semantics<parallel>], iteration_bounds = array<i64: 2, 2>, scalar_prefetch = 0 : i64, scratch_operands = 0 : i64, tpu.core_type = #tpu.core_type<tc>, window_params = [{transform_indices = @transform_0, window_bounds = array<i64: 1, 128, 128>}, {pipeline_mode = #tpu.pipeline_mode<synchronous>, transform_indices = @transform_1, window_bounds = array<i64: 128, 640>}, {transform_indices = @transform_2, window_bounds = array<i64: 128, 128>}, {transform_indices = @transform_3, window_bounds = array<i64: 128, 128>}, {transform_indices = @transform_4, window_bounds = array<i64: 1, 128, 128>}, {transform_indices = @transform_5, window_bounds = array<i64: 1, 128, 128>}, {transform_indices = @transform_6, window_bounds = array<i64: 1, 128, 128>}]} {
    %c0 = arith.constant 0 : index
    %c0_0 = arith.constant 0 : index
    %c0_1 = arith.constant 0 : index
    %0 = vector.load %arg2[%c0, %c0_0, %c0_1] : memref<1x128x128xf32, #tpu.memory_space<vmem>>, vector<1x128x128xf32>
    %1 = vector.shape_cast %0 : vector<1x128x128xf32> to vector<128x128xf32>
    %2 = arith.mulf %1, %1 : vector<128x128xf32>
    %cst = arith.constant dense<0.000000e+00> : vector<128xf32>
    %3 = vector.multi_reduction <add>, %2, %cst [1] : vector<128x128xf32> to vector<128xf32>
    %4 = vector.shape_cast %3 : vector<128xf32> to vector<128x1xf32>
    %cst_2 = arith.constant 1.280000e+02 : f32
    %5 = vector.broadcast %cst_2 : f32 to vector<128x1xf32>
    %6 = arith.divf %4, %5 : vector<128x1xf32>
    %cst_3 = arith.constant 1.1920929E-7 : f32
    %7 = vector.broadcast %cst_3 : f32 to vector<128x1xf32>
    %8 = arith.addf %6, %7 : vector<128x1xf32>
    %9 = math.rsqrt %8 : vector<128x1xf32>
    %10 = vector.broadcast %9 : vector<128x1xf32> to vector<128x128xf32>
    %11 = arith.mulf %1, %10 : vector<128x128xf32>
    %c0_4 = arith.constant 0 : index
    %c0_5 = arith.constant 0 : index
    %12 = vector.load %arg3[%c0_4, %c0_5] : memref<128x640xf32, #tpu.memory_space<vmem>>, vector<128x640xf32>
    %cst_6 = arith.constant dense<0.000000e+00> : vector<128x640xf32>
    %13 = tpu.matmul %11, %12, %cst_6 {dimension_numbers = #tpu.dot_dimension_numbers<[1], [0], [0], [1], [0, 0, 1, 1], [], []>} : vector<128x128xf32>, vector<128x640xf32>, vector<128x640xf32> -> vector<128x640xf32>
    %14 = vector.extract_strided_slice %13 {offsets = [0, 0], sizes = [128, 128], strides = [1, 1]} : vector<128x640xf32> to vector<128x128xf32>
    %15 = vector.extract_strided_slice %13 {offsets = [0, 128], sizes = [128, 128], strides = [1, 1]} : vector<128x640xf32> to vector<128x128xf32>
    %16 = vector.extract_strided_slice %13 {offsets = [0, 256], sizes = [128, 128], strides = [1, 1]} : vector<128x640xf32> to vector<128x128xf32>
    %17 = vector.extract_strided_slice %13 {offsets = [0, 384], sizes = [128, 128], strides = [1, 1]} : vector<128x640xf32> to vector<128x128xf32>
    %18 = vector.extract_strided_slice %13 {offsets = [0, 512], sizes = [128, 128], strides = [1, 1]} : vector<128x640xf32> to vector<128x128xf32>
    %c0_7 = arith.constant 0 : index
    %c0_8 = arith.constant 0 : index
    %19 = vector.load %arg4[%c0_7, %c0_8] : memref<128x128xf32, #tpu.memory_space<vmem>>, vector<128x128xf32>
    %c0_9 = arith.constant 0 : index
    %c0_10 = arith.constant 0 : index
    %20 = vector.load %arg5[%c0_9, %c0_10] : memref<128x128xf32, #tpu.memory_space<vmem>>, vector<128x128xf32>
    %21 = arith.mulf %14, %19 : vector<128x128xf32>
    %22 = arith.mulf %15, %20 : vector<128x128xf32>
    %23 = arith.addf %21, %22 : vector<128x128xf32>
    %24 = arith.mulf %16, %19 : vector<128x128xf32>
    %25 = arith.mulf %17, %20 : vector<128x128xf32>
    %26 = arith.addf %24, %25 : vector<128x128xf32>
    %c0_11 = arith.constant 0 : index
    %c0_12 = arith.constant 0 : index
    %c0_13 = arith.constant 0 : index
    %27 = vector.load %arg6[%c0_11, %c0_12, %c0_13] : memref<1x128x128xf32, #tpu.memory_space<vmem>>, vector<1x128x128xf32>
    %28 = vector.shape_cast %27 : vector<1x128x128xf32> to vector<128x128xf32>
    %29 = vector.shape_cast %23 : vector<128x128xf32> to vector<1x128x128xf32>
    tpu.vector_store %arg6[%c0_11, %c0_12, %c0_13], %29 {strides = array<i32>} : memref<1x128x128xf32, #tpu.memory_space<vmem>>, vector<1x128x128xf32>,
    %c0_14 = arith.constant 0 : index
    %c0_15 = arith.constant 0 : index
    %c0_16 = arith.constant 0 : index
    %30 = vector.load %arg7[%c0_14, %c0_15, %c0_16] : memref<1x128x128xf32, #tpu.memory_space<vmem>>, vector<1x128x128xf32>
    %31 = vector.shape_cast %30 : vector<1x128x128xf32> to vector<128x128xf32>
    %32 = vector.shape_cast %26 : vector<128x128xf32> to vector<1x128x128xf32>
    tpu.vector_store %arg7[%c0_14, %c0_15, %c0_16], %32 {strides = array<i32>} : memref<1x128x128xf32, #tpu.memory_space<vmem>>, vector<1x128x128xf32>,
    %c0_17 = arith.constant 0 : index
    %c0_18 = arith.constant 0 : index
    %c0_19 = arith.constant 0 : index
    %33 = vector.load %arg8[%c0_17, %c0_18, %c0_19] : memref<1x128x128xf32, #tpu.memory_space<vmem>>, vector<1x128x128xf32>
    %34 = vector.shape_cast %33 : vector<1x128x128xf32> to vector<128x128xf32>
    %35 = vector.shape_cast %18 : vector<128x128xf32> to vector<1x128x128xf32>
    tpu.vector_store %arg8[%c0_17, %c0_18, %c0_19], %35 {strides = array<i32>} : memref<1x128x128xf32, #tpu.memory_space<vmem>>, vector<1x128x128xf32>,
    return
  }
  func.func @transform_0(%arg0: i32, %arg1: i32) -> (i32, i32, i32) {
    %c0_i32 = arith.constant 0 : i32
    %c0_i32_0 = arith.constant 0 : i32
    return %arg1, %arg0, %c0_i32 : i32, i32, i32
  }
  func.func @transform_1(%arg0: i32, %arg1: i32) -> (i32, i32) {
    %c0_i32 = arith.constant 0 : i32
    %c0_i32_0 = arith.constant 0 : i32
    %c0_i32_1 = arith.constant 0 : i32
    return %c0_i32, %c0_i32_0 : i32, i32
  }
  func.func @transform_2(%arg0: i32, %arg1: i32) -> (i32, i32) {
    %c0_i32 = arith.constant 0 : i32
    %c0_i32_0 = arith.constant 0 : i32
    return %arg0, %c0_i32 : i32, i32
  }
  func.func @transform_3(%arg0: i32, %arg1: i32) -> (i32, i32) {
    %c0_i32 = arith.constant 0 : i32
    %c0_i32_0 = arith.constant 0 : i32
    return %arg0, %c0_i32 : i32, i32
  }
  func.func @transform_4(%arg0: i32, %arg1: i32) -> (i32, i32, i32) {
    %c0_i32 = arith.constant 0 : i32
    %c0_i32_0 = arith.constant 0 : i32
    return %arg1, %arg0, %c0_i32 : i32, i32, i32
  }
  func.func @transform_5(%arg0: i32, %arg1: i32) -> (i32, i32, i32) {
    %c0_i32 = arith.constant 0 : i32
    %c0_i32_0 = arith.constant 0 : i32
    return %arg1, %arg0, %c0_i32 : i32, i32, i32
  }
  func.func @transform_6(%arg0: i32, %arg1: i32) -> (i32, i32, i32) {
    %c0_i32 = arith.constant 0 : i32
    %c0_i32_0 = arith.constant 0 : i32
    return %arg1, %arg0, %c0_i32 : i32, i32, i32
  }
}

</mosaic_0001>

<bundles_post_ra>
// kernel: tpu_custom_call.1
= control target key start
LH: loop header
LB: loop body
LE: loop exit
PB: predicated region body
PF: predicated region fallthrough
CT: control target
= control target key end

     0   :  { %s2884_s0 = inlined_call_operand.hbm [shape: f32[2,256,128], index: 0, kind: input, shape index: {}]   ;;  %s2885_s1 = inlined_call_operand.hbm [shape: f32[128,640], index: 1, kind: input, shape index: {}]   ;;  %s2886_s2 = inlined_call_operand.hbm [shape: f32[256,128], index: 2, kind: input, shape index: {}]   ;;  %s2887_s3 = inlined_call_operand.hbm [shape: f32[256,128], index: 3, kind: input, shape index: {}]   ;;  %s2888_s4 = inlined_call_operand.hbm [shape: f32[2,256,128], index: 4, kind: output, shape index: {0}]   ;;  %s2889_s5 = inlined_call_operand.hbm [shape: f32[2,256,128], index: 5, kind: output, shape index: {1}]   ;;  %s2890_s6 = inlined_call_operand.hbm [shape: f32[2,256,128], index: 6, kind: output, shape index: {2}]  }
   0x1   :  { %2904 = sst [smem:[#allocation22_spill]] %s2884_s0 }
   0x2   :  { %2905 = sst [smem:[#allocation23_spill]] %s2886_s2 }
   0x3   :  { %2906 = sst [smem:[#allocation24_spill]] %s2887_s3 }
   0x4   :  { %2907 = sst [smem:[#allocation25_spill]] %s2888_s4 }
   0x5   :  { %2908 = sst [smem:[#allocation26_spill]] %s2889_s5 }
   0x6   :  { %2909 = sst [smem:[#allocation27_spill]] %s2890_s6 }
   0x7   :  { %12 = vsyncpa [#allocation3], 0 }
   0x8   :  { %14 = vsyncpa [#allocation3 + $0x1], 0 }
   0x9   :  { %15 = vsyncpa [#allocation6], 0 }
   0xa   :  { %16 = vsyncpa [#allocation4], 0 }
   0xb   :  { %18 = vsyncpa [#allocation4 + $0x1], 0 }
   0xc   :  { %19 = vsyncpa [#allocation11], 0 }
   0xd   :  { %21 = vsyncpa [#allocation11 + $0x1], 0  ;;  %s2202_s21 = smov 0   ;;  %s2204_s22 = smov 0  }
   0xe   :  { %s2206_s23 = smov 0   ;;  %s2208_s24 = smov 0  }
   0xf   :  { %s2210_s25 = smov 0   ;;  %s2212_s26 = smov 0  }
  0x10   :  { %s2214_s27 = smov 0   ;;  %s2216_s28 = smov 0  }
  0x11   :  { %s2218_s29 = smov 0   ;;  %s2220_s30 = smov 0  }
  0x12   :  { %s2222_s7 = smov 0  }
  0x13 LB: > { %2910 = sst [smem:[#allocation18_spill]] %s2135_s27  ;;  %s36_s8 = sadd.s32 1, %s2143_s29  ;;  %s2151_s7 = sphi %s2222_s7, %s27_s7   ;;  %s2147_s30 = sphi %s2220_s30, %s2951_s30   ;;  %s2143_s29 = sphi %s2218_s29, %s2950_s29   ;;  %s2139_s28 = sphi %s2216_s28, %s2949_s28   ;;  %s2135_s27 = sphi %s2214_s27, %s2948_s27   ;;  %s2131_s26 = sphi %s2212_s26, %s2947_s26   ;;  %s2127_s25 = sphi %s2210_s25, %s2946_s25   ;;  %s2123_s24 = sphi %s2208_s24, %s2945_s24   ;;  %s2119_s23 = sphi %s2206_s23, %s2944_s23   ;;  %s2115_s22 = sphi %s2204_s22, %s2943_s22   ;;  %s2111_s21 = sphi %s2202_s21, %s2942_s21  }
  0x14   : > { %2911 = sst [smem:[#allocation19_spill]] %s2139_s28  ;;  %s39_s9 = sadd.s32 1, %s2147_s30 }
  0x15   : > { %p37_p0 = scmp.ge.s32.totalorder %s36_s8, 2  ;;  %s48_s10 = sadd.s32 1, %s2131_s26 }
  0x16   : > { %p55_p1 = scmp.ne.s32.totalorder %s2131_s26, %s2127_s25  ;;  %p56_p2 = scmp.eq.s32.totalorder %s2151_s7, 0 }
  0x17   : > { %s2953_s8 = smov (%p37_p0, %s36_s8), 0  ;;  %s2955_s9 = smov (!%p37_p0, %s39_s9), %s2147_s30 }
  0x18   : > { %2912 = sst [smem:[#allocation20_spill]] %s2953_s8  ;;  %s43_s11 = ssub.s32 %s2143_s29, %s2953_s8 }
  0x19   : > { %p2273_p3 = por %p56_p2, %p55_p1  ;;  %p41_p4 = scmp.ge.s32.totalorder %s2955_s9, 2 }
  0x1a   : > { %p1726_p5 = scmp.lt.s32.totalorder %s2151_s7, 4  ;;  %s255_s13 = sand.u32 1, %s2151_s7  }
  0x1b   : > { %s2957_s9 = smov (%p41_p4, %s2955_s9), 0  ;;  %s257_s14 = sand.u32 1, %s2131_s26  }
  0x1c   : > { %2914 = sst [smem:[#allocation21_spill]] %s2957_s9  ;;  %s2284_s15 = ssub.s32 %s2147_s30, %s2957_s9 }
  0x1d   : > { %s1531_s16 = sshll.u32 %s257_s14, 7  ;;  %s45_s17 = sor.u32 %s2284_s15, %s43_s11 }
  0x1e   : > { %p93_p6 = scmp.eq.s32.totalorder %s2284_s15, 0  ;;  %p46_p7 = scmp.eq.s32.totalorder %s45_s17, 0 }
  0x1f   : > { %s1532_s18 = sshll.u32 %s2147_s30, 4  ;;  %s1533_s19 = sshll.u32 %s2143_s29, 5 }
  0x20   : > { %s2291_s20 = scalar_select %p46_p7, %s2131_s26, %s48_s10  }
  0x21   : > { %s265_s8 = sadd.s32 %s1533_s19, %s1532_s18  ;;  %s259_s6 = scalar_lea.vmem [#allocation2], %s1531_s16 }
  0x22   : > { %s268_s4 = sshll.u32 %s259_s6, 4  ;;  %s1534_s5 = sshll.u32 %s265_s8, 7  ;;  %s269_s4 = int_to_ptr.vmem [resolvable:$true] %s268_s4 }
  0x23   : > { %s2915_s0 = sld [smem:[#allocation22_spill]]  ;;  %p2300_p8 = pnand %p1726_p5, %p2273_p3 }
  0x24   : > { %s2304_s11 = scalar_lea.sflag [#allocation3], %s255_s13  ;;  %s1870_s10 = scalar_lea.vmem %s269_s4, 2048 }
  0x25   : > { %p1859_p9 = pneg %p2300_p8  ;;  %p1871_p10 = scmp.ne.s32.totalorder %s269_s4, %s1870_s10 }
  0x26   : > { %s2153_s6 = smov [#allocation2]  }
  0x27   : > { %p1873_p11 = pnand %p1871_p10, %p1859_p9  ;;  %s1875_s8 = sshll.u32 %s2153_s6, 4  ;;  %s1876_s8 = int_to_ptr.vmem [resolvable:$false] %s1875_s8 }
  0x28   : > { %s1877_s27 = scalar_lea.vmem %s1876_s8, 4096  ;;  %p1878_p13 = scmp.lt.s32.totalorder %s269_s4, %s1876_s8 }
  0x29   : > { %s267_s9 = scalar_lea.hbm %s2915_s0, %s1534_s5  ;;  %p1874_p12 = pneg %p1873_p11 }
  0x2a   : > { %p1879_p0 = scmp.lt.s32.totalorder %s1877_s27, %s1870_s10 }
  0x2c   : > { %p1880_p4 = por %p1879_p0, %p1878_p13 }
  0x2e   : > { %p1881_p3 = pnand %p1880_p4, %p1874_p12 }
  0x30   : > { %1884 = shalt.err (!%p1881_p3)
}
  0x31   : > { %s2898_s5 = smov 128   ;;  %s2899_s28 = smov 8  }
  0x32   : > { %1708 = dma.hbm_to_vmem [thread:$0]  (!%p2300_p8), %s267_s9, 2048, %s269_s4, %s2304_s11, %s2898_s5, %s2898_s5, %s2899_s28  }
  0x33   : > { %s1563_s12 = sshll.u32 %s2147_s30, 11  ;;  %s95_s13 = sadd.s32 1, %s2119_s23 }
  0x34   : > { %p102_p7 = scmp.ne.s32.totalorder %s2119_s23, %s2115_s22  ;;  %s280_s17 = sand.u32 1, %s2119_s23  }
  0x35   : > { %s2321_s16 = scalar_select %p93_p6, %s2119_s23, %s95_s13  }
  0x36   : > { %p104_p9 = por %p102_p7, %p56_p2  ;;  %s2326_s18 = sshll.u32 %s280_s17, 7 }
  0x37   : > { %s2917_s2 = sld [smem:[#allocation23_spill]]  ;;  %s282_s9 = scalar_lea.vmem [#allocation7], %s2326_s18 }
  0x38   : > { %p2335_p10 = pnand %p1726_p5, %p104_p9  ;;  %s289_s15 = sshll.u32 %s282_s9, 4  ;;  %s290_s15 = int_to_ptr.vmem [resolvable:$true] %s289_s15 }
  0x39   : > { %s1898_s6 = scalar_lea.vmem %s290_s15, 2048  ;;  %s2156_s8 = smov [#allocation7]  }
  0x3a   : > { %p2896_p2 = pneg %p2335_p10  ;;  %p1899_p6 = scmp.ne.s32.totalorder %s290_s15, %s1898_s6 }
  0x3b   : > { %s1903_s27 = sshll.u32 %s2156_s8, 4  ;;  %s1904_s27 = int_to_ptr.vmem [resolvable:$false] %s1903_s27 }
  0x3c   : > { %p1901_p8 = pnand %p1899_p6, %p2896_p2  ;;  %s1905_s13 = scalar_lea.vmem %s1904_s27, 4096 }
  0x3d   : > { %s288_s14 = scalar_lea.hbm %s2917_s2, %s1563_s12  ;;  %p1906_p5 = scmp.lt.s32.totalorder %s290_s15, %s1904_s27 }
  0x3e   : > { %p1902_p11 = pneg %p1901_p8  ;;  %p1907_p12 = scmp.lt.s32.totalorder %s1905_s13, %s1898_s6 }
  0x40   : > { %p1908_p13 = por %p1907_p12, %p1906_p5 }
  0x42   : > { %p1909_p0 = pnand %p1908_p13, %p1902_p11 }
  0x44   : > { %1912 = shalt.err (!%p1909_p0)
}
  0x45   : > { %1711 = dma.hbm_to_vmem [thread:$0]  (!%p2335_p10), %s288_s14, 2048, %s290_s15, %s2304_s11, %s2898_s5, %s2898_s5, %s2899_s28  }
  0x46   : > { %s2352_s17 = sadd.s32 4294967295, %s2151_s7   ;;  %s2897_s19 = sadd.s32 4294967294, %s2151_s7  }
  0x47   : > { %p61_p4 = scmp.ne.s32.totalorder %s2127_s25, %s2123_s24  ;;  %p2900_p3 = scmp.eq.s32.totalorder %s2352_s17, 0 }
  0x48   : > { %p108_p7 = scmp.ne.s32.totalorder %s2115_s22, %s2111_s21  ;;  %p160_p9 = scmp.eq.s32.totalorder %s2352_s17, 3 }
  0x49   : > { %p166_p6 = scmp.eq.s32.totalorder %s2897_s19, 3  ;;  %p2365_p8 = por %p2900_p3, %p61_p4 }
  0x4a   : > { %p2371_p11 = por %p108_p7, %p2900_p3  ;;  %p2378_p5 = por %p160_p9, %p55_p1 }
  0x4b   : > { %p2382_p12 = por %p166_p6, %p61_p4  ;;  %p1528_p13 = scmp.ge.s32.totalorder %s2151_s7, 1 }
  0x4c   : > { %p229_p0 = scmp.lt.s32.totalorder %s2151_s7, 5  ;;  %s2157_s6 = smov [#allocation5]  }
  0x4d   : > { %s2922_s21 = scalar_select %p2382_p12, 1, 0 }
  0x4e   : > { %p2388_p2 = pnand %p1528_p13, %p229_p0  ;;  %s241_s8 = sshll.u32 %s2157_s6, 4  ;;  %s242_s8 = int_to_ptr.vmem [resolvable:$true] %s241_s8 }
  0x4f   : > { %s303_s13 = scalar_lea.vmem [#allocation8], %s2326_s18  ;;  %s2925_s3 = sld [smem:[#allocation24_spill]] }
  0x50   : > { %p1701_p7 = pneg %p2388_p2  ;;  %s310_s19 = sshll.u32 %s303_s13, 4  ;;  %s2408_s19 = int_to_ptr.vmem [resolvable:$true] %s310_s19 }
  0x51   : > { %s1924_s6 = scalar_lea.vmem %s242_s8, 10240  ;;  %p1932_p0 = scmp.lt.s32.totalorder %s242_s8, %s242_s8 }
  0x52   : > { %p2396_p1 = pnand %p1701_p7, %p2900_p3  ;;  %p1925_p9 = scmp.ne.s32.totalorder %s242_s8, %s1924_s6 }
  0x53   : > { %p1933_p7 = scmp.lt.s32.totalorder %s1924_s6, %s1924_s6 }
  0x54   : > { %p1915_p4 = pneg %p2396_p1 }
  0x55   : > { %s2406_s0 = scalar_lea.hbm %s2925_s3, %s1563_s12  ;;  %p1934_p3 = por %p1933_p7, %p1932_p0 }
  0x56   : > { %p1927_p6 = pnand %p1925_p9, %p1915_p4 }
  0x58   : > { %p1928_p13 = pneg %p1927_p6 }
  0x5a   : > { %p1935_p12 = pnand %p1934_p3, %p1928_p13 }
  0x5c   : > { %1938 = shalt.err (!%p1935_p12)
}
  0x5d   : > { %s2158_s18 = smov 640   ;;  %s2159_s5 = smov 40  }
  0x5e   : > { %1704 = dma.hbm_to_vmem [thread:$0]  (!%p2396_p1), %s2885_s1, 10240, %s242_s8, [#allocation6], %s2158_s18, %s2158_s18, %s2159_s5  }
  0x5f   : > { %s1952_s13 = scalar_lea.vmem %s2408_s19, 2048  ;;  %p2926_p9 = pneg %p2335_p10 }
  0x60   : > { %p1953_p4 = scmp.ne.s32.totalorder %s2408_s19, %s1952_s13  ;;  %s2160_s6 = smov [#allocation8]  }
  0x61   : > { %s1957_s2 = sshll.u32 %s2160_s6, 4  ;;  %s1958_s2 = int_to_ptr.vmem [resolvable:$false] %s1957_s2 }
  0x62   : > { %p1955_p6 = pnand %p1953_p4, %p2926_p9  ;;  %s1959_s3 = scalar_lea.vmem %s1958_s2, 4096 }
  0x63   : > { %p1960_p3 = scmp.lt.s32.totalorder %s2408_s19, %s1958_s2  ;;  %p1961_p12 = scmp.lt.s32.totalorder %s1959_s3, %s1952_s13 }
  0x64   : > { %p1956_p0 = pneg %p1955_p6 }
  0x65   : > { %p1962_p13 = por %p1961_p12, %p1960_p3 }
  0x67   : > { %p1963_p7 = pnand %p1962_p13, %p1956_p0 }
  0x69   : > { %1966 = shalt.err (!%p1963_p7)
}
  0x6a   : > { %s2927_s27 = smov 8   ;;  %s2928_s28 = smov 128  }
  0x6b   : > { %1714 = dma.hbm_to_vmem [thread:$0]  (!%p2335_p10), %s2406_s0, 2048, %s2408_s19, %s2304_s11, %s2928_s28, %s2928_s28, %s2927_s27  }
  0x6c   : > { %322 = sbr.rel (%p2388_p2) target bundleno = 602 (0x25a), region = 36  ;;  %s324_s2 = sand.u32 (!%p2388_p2), 1, %s2352_s17  }
  0x6d   : > { %s2901_s3 = sand.u32 (!%p2388_p2), 1, %s2127_s25   ;;  %s325_s4 = scalar_lea.sflag (!%p2388_p2), [#allocation3], %s324_s2 }
  0x6e   : > { %s2437_s8 = sshll.u32 (!%p2388_p2), %s2901_s3, 7 }
  0x6f   : > { %s2442_s18 = scalar_lea.vmem (!%p2388_p2), [#allocation2], %s2437_s8 }
  0x71   : > { %2090 = dma.done.wait (%p2365_p8), %s325_s4, 2048  }
  0x72   : > { %2092 = vsyncadd (%p2365_p8), %s325_s4, 4294965248  ;;  %p2929_p10 = scmp.eq.s32.totalorder %s2352_s17, 0 }
  0x74   : > { %2094 = dma.done.wait (%p2929_p10), [#allocation6], 10240   ;;  %p2930_p2 = pmov %p2929_p10 }
  0x75   : > { %s339_s0 = sand.u32 1, %s2115_s22  }
  0x76   : > { %2096 = vsyncadd (%p2930_p2), [#allocation6], 4294957056  ;;  %s2453_s11 = sshll.u32 %s339_s0, 7 }
  0x77   : > { %s2456_s19 = scalar_lea.vmem [#allocation7], %s2453_s11 }
  0x78   : > { %2098 = dma.done.wait (%p2371_p11), %s325_s4, 4096  }
  0x79   : > { %2100 = vsyncadd (%p2371_p11), %s325_s4, 4294963200  ;;  %v2463_v0 = vld [vmem:[%s2442_s18] sm:$0xff]  ;;  %v2466_v1 = vld [vmem:[%s2442_s18 + $0x8] sm:$0xff]  ;;  %s2647_s10 = scalar_lea.vmem [#allocation8], %s2453_s11  ;;  %s2653_s14 = scalar_lea.vmem [#allocation9], %s2437_s8 }
  0x7a   : > { %v2469_v2 = vld [vmem:[%s2442_s18 + $0x10] sm:$0xff]  ;;  %v421_v3 = vmul.f32 %v2463_v0, %v2463_v0  ;;  %v2476_v5 = vld [vmem:[%s2442_s18 + $0x18] sm:$0xff]  ;;  %v422_v6 = vmul.f32 %v2466_v1, %v2466_v1  ;;  %v2483_v8 = vld [vmem:[%s2442_s18 + $0x20] sm:$0xff]  ;;  %s2657_s15 = scalar_lea.vmem [#allocation10], %s2437_s8  ;;  %s2931_s5 = sld [smem:[#allocation19_spill]] }
  0x7b   : > { %v423_v4 = vmul.f32 %v2469_v2, %v2469_v2  ;;  %v424_v7 = vmul.f32 %v2476_v5, %v2476_v5  ;;  %v2486_v9 = vld [vmem:[%s2442_s18 + $0x28] sm:$0xff]  ;;  %v610_v10 = vld [vmem:[#allocation5 + $0x260] sm:$0xff]  ;;  %v612_v11 = vld [vmem:[#allocation5 + $0x270] sm:$0xff]  ;;  %v425_v15 = vmul.f32 %v2483_v8, %v2483_v8  ;;  %s2932_s12 = sld [smem:[#allocation18_spill]]  ;;  %s1301_s4 = sshll.u32 %s2657_s15, 4  ;;  %s2733_s4 = int_to_ptr.vmem [resolvable:$true] %s1301_s4 }
  0x7c   : > { %437 = vadd.xlane.f32.xlu0 %v421_v3  ;;  %614 = vmatprep.subr.mxu0 %v610_v10  ;;  %v609_v12 = vld [vmem:[#allocation5 + $0x258] sm:$0xff]  ;;  %v611_v13 = vld [vmem:[#allocation5 + $0x268] sm:$0xff]  ;;  %v426_v16 = vmul.f32 %v2486_v9, %v2486_v9  ;;  %v604_v18 = vld [vmem:[#allocation5 + $0x230] sm:$0xff]  ;;  %s1967_s0 = scalar_lea.vmem %s2733_s4, 2048  ;;  %s2162_s11 = smov [#allocation10]  }
  0x7d   : > { %441 = vadd.xlane.f32.xlu1 %v423_v4  ;;  %775 = vmatprep.subr.mxu1 %v612_v11  ;;  %v605_v14 = vld [vmem:[#allocation5 + $0x238] sm:$0xff]  ;;  %v607_v17 = vld [vmem:[#allocation5 + $0x248] sm:$0xff]  ;;  %v606_v19 = vld [vmem:[#allocation5 + $0x240] sm:$0xff]  ;;  %p1968_p8 = scmp.ne.s32.totalorder %s2733_s4, %s1967_s0 }
  0x7e   : > { %v2493_v20 = vld [vmem:[%s2442_s18 + $0x30] sm:$0xff]  ;;  %v2496_v21 = vld [vmem:[%s2442_s18 + $0x38] sm:$0xff]  ;;  %615 = vmatpush1.msra.mxu0 %v609_v12  ;;  %776 = vmatpush1.msra.mxu1 %v611_v13  ;;  %v602_v23 = vld [vmem:[#allocation5 + $0x220] sm:$0xff] }
  0x7f   : > { %616 = vmatprep.subr.mxu0 %v605_v14  ;;  %777 = vmatprep.subr.mxu1 %v607_v17  ;;  %v600_v22 = vld [vmem:[#allocation5 + $0x210] sm:$0xff]  ;;  %v599_v24 = vld [vmem:[#allocation5 + $0x208] sm:$0xff]  ;;  %v601_v25 = vld [vmem:[#allocation5 + $0x218] sm:$0xff]  ;;  %v427_v26 = vmul.f32 %v2493_v20, %v2493_v20  ;;  %v428_v27 = vmul.f32 %v2496_v21, %v2496_v21  ;;  %p1969_p11 = pnand %p1968_p8, %p2378_p5 }
  0x80   : > { %439 = vadd.xlane.f32.xlu0 %v422_v6  ;;  %617 = vmatpush1.msra.mxu0 %v604_v18  ;;  %v595_v28 = vld [vmem:[#allocation5 + $0x1e8] sm:$0xff]  ;;  %v597_v29 = vld [vmem:[#allocation5 + $0x1f8] sm:$0xff]  ;;  %v2503_v30 = vld [vmem:[%s2442_s18 + $0x40] sm:$0xff]  ;;  %s1552_s13 = sshll.u32 %s2931_s5, 4  ;;  %s2729_s5 = scalar_lea.vmem [#allocation12], %s2437_s8 }
  0x81   : > { %443 = vadd.xlane.f32.xlu1 %v424_v7  ;;  %778 = vmatpush1.msra.mxu1 %v606_v19  ;;  %v2506_v31 = vld [vmem:[%s2442_s18 + $0x48] sm:$0xff]  ;;  %v594_v32 = vld [vmem:[#allocation5 + $0x1e0] sm:$0xff]  ;;  %v596_v33 = vld [vmem:[#allocation5 + $0x1f0] sm:$0xff]  ;;  %v429_v36 = vmul.f32 %v2503_v30, %v2503_v30  ;;  %s1553_s6 = sshll.u32 %s2932_s12, 5  ;;  %s2749_s8 = scalar_lea.sflag [#allocation11], %s324_s2 }
  0x82   : > { %618 = vmatprep.subr.mxu0 %v600_v22  ;;  %779 = vmatprep.subr.mxu1 %v602_v23  ;;  %v590_v34 = vld [vmem:[#allocation5 + $0x1c0] sm:$0xff]  ;;  %v592_v35 = vld [vmem:[#allocation5 + $0x1d0] sm:$0xff]  ;;  %v430_v37 = vmul.f32 %v2506_v31, %v2506_v31  ;;  %v589_v38 = vld [vmem:[#allocation5 + $0x1b8] sm:$0xff]  ;;  %s1280_s27 = sadd.s32 %s1553_s6, %s1552_s13  ;;  %s2934_s6 = sld [smem:[#allocation25_spill]] }
  0x83   : > { %619 = vmatpush1.msra.mxu0 %v599_v24  ;;  %780 = vmatpush1.msra.mxu1 %v601_v25  ;;  %v591_v39 = vld [vmem:[#allocation5 + $0x1c8] sm:$0xff]  ;;  %v2513_v40 = vld [vmem:[%s2442_s18 + $0x50] sm:$0xff]  ;;  %v2516_v41 = vld [vmem:[%s2442_s18 + $0x58] sm:$0xff]  ;;  %s2716_s28 = sshll.u32 %s1280_s27, 7  ;;  %p1970_p1 = pneg %p1969_p11 }
  0x84   : > { %445 = vadd.xlane.f32.xlu0 %v425_v15  ;;  %620 = vmatprep.subr.mxu0 %v595_v28  ;;  %v585_v42 = vld [vmem:[#allocation5 + $0x198] sm:$0xff]  ;;  %v587_v43 = vld [vmem:[#allocation5 + $0x1a8] sm:$0xff]  ;;  %v584_v44 = vld [vmem:[#allocation5 + $0x190] sm:$0xff]  ;;  %v431_v46 = vmul.f32 %v2513_v40, %v2513_v40  ;;  %v432_v47 = vmul.f32 %v2516_v41, %v2516_v41  ;;  %s1971_s12 = sshll.u32 %s2162_s11, 4  ;;  %s1972_s12 = int_to_ptr.vmem [resolvable:$false] %s1971_s12 }
  0x85   : > { %447 = vadd.xlane.f32.xlu1 %v426_v16  ;;  %781 = vmatprep.subr.mxu1 %v597_v29  ;;  %v586_v45 = vld [vmem:[#allocation5 + $0x1a0] sm:$0xff]  ;;  %v580_v48 = vld [vmem:[#allocation5 + $0x170] sm:$0xff]  ;;  %v2526_v51 = vld [vmem:[%s2442_s18 + $0x68] sm:$0xff]  ;;  %s1973_s13 = scalar_lea.vmem %s1972_s12, 4096  ;;  %p1974_p4 = scmp.lt.s32.totalorder %s2733_s4, %s1972_s12 }
  0x86   : > { %621 = vmatpush1.msra.mxu0 %v594_v32  ;;  %782 = vmatpush1.msra.mxu1 %v596_v33  ;;  %v582_v49 = vld [vmem:[#allocation5 + $0x180] sm:$0xff]  ;;  %v579_v52 = vld [vmem:[#allocation5 + $0x168] sm:$0xff]  ;;  %v581_v53 = vld [vmem:[#allocation5 + $0x178] sm:$0xff]  ;;  %v434_v57 = vmul.f32 %v2526_v51, %v2526_v51  ;;  %p1975_p9 = scmp.lt.s32.totalorder %s1973_s13, %s1967_s0 }
  0x87   : > { %622 = vmatprep.subr.mxu0 %v590_v34  ;;  %783 = vmatprep.subr.mxu1 %v592_v35  ;;  %v2523_v50 = vld [vmem:[%s2442_s18 + $0x60] sm:$0xff]  ;;  %v575_v54 = vld [vmem:[#allocation5 + $0x148] sm:$0xff]  ;;  %v577_v55 = vld [vmem:[#allocation5 + $0x158] sm:$0xff] }
  0x88   : > { %449 = vadd.xlane.f32.xlu0 %v427_v26  ;;  %623 = vmatpush1.msra.mxu0 %v589_v38  ;;  %v433_v56 = vmul.f32 %v2523_v50, %v2523_v50  ;;  %v574_v58 = vld [vmem:[#allocation5 + $0x140] sm:$0xff]  ;;  %v576_v59 = vld [vmem:[#allocation5 + $0x150] sm:$0xff]  ;;  %v2536_v61 = vld [vmem:[%s2442_s18 + $0x78] sm:$0xff]  ;;  %s2739_s27 = scalar_lea.hbm %s2934_s6, %s2716_s28  ;;  %p1976_p6 = por %p1975_p9, %p1974_p4 }
  0x89   : > { %451 = vadd.xlane.f32.xlu1 %v428_v27  ;;  %784 = vmatpush1.msra.mxu1 %v591_v39  ;;  %v2533_v60 = vld [vmem:[%s2442_s18 + $0x70] sm:$0xff]  ;;  %v570_v62 = vld [vmem:[#allocation5 + $0x120] sm:$0xff]  ;;  %v569_v3 = vld [vmem:[#allocation5 + $0x118] sm:$0xff]  ;;  %v436_v7 = vmul.f32 %v2536_v61, %v2536_v61  ;;  %s1283_s18 = sshll.u32 %s2653_s14, 4  ;;  %s2741_s18 = int_to_ptr.vmem [resolvable:$true] %s1283_s18 }
  0x8a   : > { %624 = vmatprep.subr.mxu0 %v585_v42  ;;  %785 = vmatprep.subr.mxu1 %v587_v43  ;;  %v572_v63 = vld [vmem:[#allocation5 + $0x130] sm:$0xff]  ;;  %v571_v4 = vld [vmem:[#allocation5 + $0x128] sm:$0xff]  ;;  %v435_v6 = vmul.f32 %v2533_v60, %v2533_v60  ;;  %v565_v10 = vld [vmem:[#allocation5 + $0xf8] sm:$0xff]  ;;  %p1977_p0 = pnand %p1976_p6, %p1970_p1 }
  0x8b   : > { %625 = vmatpush1.msra.mxu0 %v584_v44  ;;  %786 = vmatpush1.msra.mxu1 %v586_v45  ;;  %v567_v11 = vld [vmem:[#allocation5 + $0x108] sm:$0xff]  ;;  %v564_v12 = vld [vmem:[#allocation5 + $0xf0] sm:$0xff]  ;;  %v566_v13 = vld [vmem:[#allocation5 + $0x100] sm:$0xff]  ;;  %v2161_v45 = vmov 0.0  }
  0x8c   : > { %453 = vadd.xlane.f32.xlu0 %v429_v36  ;;  %626 = vmatprep.subr.mxu0 %v580_v48  ;;  %v560_v14 = vld [vmem:[#allocation5 + $0xd0] sm:$0xff]  ;;  %v562_v15 = vld [vmem:[#allocation5 + $0xe0] sm:$0xff]  ;;  %v559_v16 = vld [vmem:[#allocation5 + $0xc8] sm:$0xff] }
  0x8d   : > { %455 = vadd.xlane.f32.xlu1 %v430_v37  ;;  %787 = vmatprep.subr.mxu1 %v582_v49  ;;  %v561_v17 = vld [vmem:[#allocation5 + $0xd8] sm:$0xff]  ;;  %v555_v18 = vld [vmem:[#allocation5 + $0xa8] sm:$0xff]  ;;  %v554_v22 = vld [vmem:[#allocation5 + $0xa0] sm:$0xff] }
  0x8e   : > { %627 = vmatpush1.msra.mxu0 %v579_v52  ;;  %788 = vmatpush1.msra.mxu1 %v581_v53  ;;  %v557_v19 = vld [vmem:[#allocation5 + $0xb8] sm:$0xff]  ;;  %v556_v23 = vld [vmem:[#allocation5 + $0xb0] sm:$0xff]  ;;  %v550_v24 = vld [vmem:[#allocation5 + $0x80] sm:$0xff] }
  0x8f   : > { %628 = vmatprep.subr.mxu0 %v575_v54  ;;  %789 = vmatprep.subr.mxu1 %v577_v55  ;;  %v552_v25 = vld [vmem:[#allocation5 + $0x90] sm:$0xff]  ;;  %v549_v26 = vld [vmem:[#allocation5 + $0x78] sm:$0xff]  ;;  %v551_v27 = vld [vmem:[#allocation5 + $0x88] sm:$0xff] }
  0x90   : > { %457 = vadd.xlane.f32.xlu0 %v431_v46  ;;  %629 = vmatpush1.msra.mxu0 %v574_v58  ;;  %v545_v28 = vld [vmem:[#allocation5 + $0x58] sm:$0xff]  ;;  %v547_v29 = vld [vmem:[#allocation5 + $0x68] sm:$0xff]  ;;  %v544_v32 = vld [vmem:[#allocation5 + $0x50] sm:$0xff] }
  0x91   : > { %459 = vadd.xlane.f32.xlu1 %v432_v47  ;;  %790 = vmatpush1.msra.mxu1 %v576_v59  ;;  %v546_v33 = vld [vmem:[#allocation5 + $0x60] sm:$0xff]  ;;  %v540_v34 = vld [vmem:[#allocation5 + $0x30] sm:$0xff]  ;;  %v539_v36 = vld [vmem:[#allocation5 + $0x28] sm:$0xff] }
  0x92   : > { %630 = vmatprep.subr.mxu0 %v570_v62  ;;  %791 = vmatprep.subr.mxu1 %v572_v63  ;;  %v542_v35 = vld [vmem:[#allocation5 + $0x40] sm:$0xff]  ;;  %v541_v37 = vld [vmem:[#allocation5 + $0x38] sm:$0xff]  ;;  %v535_v38 = vld [vmem:[#allocation5 + $0x8] sm:$0xff] }
  0x93   : > { %631 = vmatpush1.msra.mxu0 %v569_v3  ;;  %792 = vmatpush1.msra.mxu1 %v571_v4  ;;  %v537_v39 = vld [vmem:[#allocation5 + $0x18] sm:$0xff]  ;;  %v534_v42 = vld [vmem:[#allocation5] sm:$0xff]  ;;  %v536_v43 = vld [vmem:[#allocation5 + $0x10] sm:$0xff] }
  0x94   : > { %461 = vadd.xlane.f32.xlu0 %v433_v56  ;;  %632 = vmatprep.subr.mxu0 %v565_v10  ;;  %v613_v44 = vld [vmem:[#allocation5 + $0x278] sm:$0xff] }
  0x95   : > { %463 = vadd.xlane.f32.xlu1 %v434_v57  ;;  %793 = vmatprep.subr.mxu1 %v567_v11 }
  0x96   : > { %633 = vmatpush1.msra.mxu0 %v564_v12  ;;  %794 = vmatpush1.msra.mxu1 %v566_v13 }
  0x97   : > { %634 = vmatprep.subr.mxu0 %v560_v14  ;;  %795 = vmatprep.subr.mxu1 %v562_v15 }
  0x98   : > { %465 = vadd.xlane.f32.xlu0 %v435_v6  ;;  %635 = vmatpush1.msra.mxu0 %v559_v16  ;;  %v608_v16 = vld [vmem:[#allocation5 + $0x250] sm:$0xff] }
  0x99   : > { %467 = vadd.xlane.f32.xlu1 %v436_v7  ;;  %796 = vmatpush1.msra.mxu1 %v561_v17 }
  0x9a   : > { %636 = vmatprep.subr.mxu0 %v555_v18  ;;  %797 = vmatprep.subr.mxu1 %v557_v19 }
  0x9b   : > { %637 = vmatpush1.msra.mxu0 %v554_v22  ;;  %798 = vmatpush1.msra.mxu1 %v556_v23 }
  0x9c   : > { %638 = vmatprep.subr.mxu0 %v550_v24  ;;  %799 = vmatprep.subr.mxu1 %v552_v25  ;;  %v603_v24 = vld [vmem:[#allocation5 + $0x228] sm:$0xff] }
  0x9d   : > { %639 = vmatpush1.msra.mxu0 %v549_v26  ;;  %800 = vmatpush1.msra.mxu1 %v551_v27 }
  0x9e   : > { %640 = vmatprep.subr.mxu0 %v545_v28  ;;  %801 = vmatprep.subr.mxu1 %v547_v29 }
  0x9f   : > { %641 = vmatpush1.msra.mxu0 %v544_v32  ;;  %802 = vmatpush1.msra.mxu1 %v546_v33 }
  0xa0   : > { %642 = vmatprep.subr.mxu0 %v540_v34  ;;  %803 = vmatprep.subr.mxu1 %v542_v35 }
  0xa1   : > { %643 = vmatpush1.msra.mxu0 %v539_v36  ;;  %804 = vmatpush1.msra.mxu1 %v541_v37  ;;  %v593_v36 = vld [vmem:[#allocation5 + $0x1d8] sm:$0xff] }
  0xa2   : > { %644 = vmatprep.subr.mxu0 %v535_v38  ;;  %805 = vmatprep.subr.mxu1 %v537_v39 }
  0xa3   : > { %645 = vmatpush1.msra.mxu0 %v534_v42  ;;  %806 = vmatpush1.msra.mxu1 %v536_v43  ;;  %v588_v42 = vld [vmem:[#allocation5 + $0x1b0] sm:$0xff] }
  0xa4   : > { %678 = vmatprep.mubr.f32.mxu0 %v2161_v45  ;;  %839 = vmatprep.mubr.f32.mxu1 %v2161_v45 }
  0xa5   : > { %1597 = vmatprep.subr.mxu0 %v613_v44  ;;  %1653 = vmatprep.subr.mxu1 %v613_v44 }
 0x105   : > { %v438_v46 = vpop.xlane.xlu0 %437 }
 0x106   : > { %v442_v47 = vpop.xlane.xlu1 %441  ;;  %v470_v48 = vmul.f32 0.0078125, %v438_v46 }
 0x107   : > { %v472_v49 = vmul.f32 0.0078125, %v442_v47 }
 0x108   : > { %v486_v52 = vadd.f32 1.1920929e-07, %v470_v48 }
 0x109   : > { %v440_v53 = vpop.xlane.xlu0 %439  ;;  %v488_v54 = vadd.f32 1.1920929e-07, %v472_v49  ;;  %v583_v49 = vld [vmem:[#allocation5 + $0x188] sm:$0xff] }
 0x10a   : > { %v444_v55 = vpop.xlane.xlu1 %443  ;;  %1825 = vrsqrt.f32 %v486_v52  ;;  %v471_v56 = vmul.f32 0.0078125, %v440_v53 }
 0x10b   : > { %v473_v57 = vmul.f32 0.0078125, %v444_v55  ;;  %1827 = vrsqrt.f32 %v488_v54  ;;  %v578_v55 = vld [vmem:[#allocation5 + $0x160] sm:$0xff] }
 0x10c   : > { %v487_v58 = vadd.f32 1.1920929e-07, %v471_v56 }
 0x10d   : > { %v446_v59 = vpop.xlane.xlu0 %445  ;;  %v489_v62 = vadd.f32 1.1920929e-07, %v473_v57 }
 0x10e   : > { %1829 = vrsqrt.f32 %v487_v58  ;;  %v474_v63 = vmul.f32 0.0078125, %v446_v59  ;;  %v448_v3 = vpop.xlane.xlu1 %447 }
 0x10f   : > { %1831 = vrsqrt.f32 %v489_v62  ;;  %v475_v6 = vmul.f32 0.0078125, %v448_v3 }
 0x110   : > { %v490_v4 = vadd.f32 1.1920929e-07, %v474_v63  ;;  %v573_v63 = vld [vmem:[#allocation5 + $0x138] sm:$0xff] }
 0x111   : > { %v450_v7 = vpop.xlane.xlu0 %449  ;;  %v491_v10 = vadd.f32 1.1920929e-07, %v475_v6 }
 0x112   : > { %1833 = vrsqrt.f32 %v490_v4  ;;  %v476_v11 = vmul.f32 0.0078125, %v450_v7  ;;  %v452_v13 = vpop.xlane.xlu1 %451  ;;  %v568_v7 = vld [vmem:[#allocation5 + $0x110] sm:$0xff] }
 0x113   : > { %1835 = vrsqrt.f32 %v491_v10  ;;  %v477_v18 = vmul.f32 0.0078125, %v452_v13 }
 0x114   : > { %v492_v17 = vadd.f32 1.1920929e-07, %v476_v11 }
 0x115   : > { %v454_v22 = vpop.xlane.xlu0 %453  ;;  %v493_v23 = vadd.f32 1.1920929e-07, %v477_v18 }
 0x116   : > { %1837 = vrsqrt.f32 %v492_v17  ;;  %v478_v26 = vmul.f32 0.0078125, %v454_v22  ;;  %v456_v28 = vpop.xlane.xlu1 %455  ;;  %v558_v17 = vld [vmem:[#allocation5 + $0xc0] sm:$0xff] }
 0x117   : > { %v1826_v12 = vpop.eup %1825  ;;  %1839 = vrsqrt.f32 %v493_v23  ;;  %v479_v32 = vmul.f32 0.0078125, %v456_v28 }
 0x118   : > { %v2545_v14 = vmul.f32 %v1826_v12, %v2463_v0  ;;  %v1828_v15 = vpop.eup %1827  ;;  %v494_v29 = vadd.f32 1.1920929e-07, %v478_v26 }
 0x119   : > { %v2557_v25 = vmul.f32 %v1828_v15, %v2469_v2  ;;  %v458_v34 = vpop.xlane.xlu0 %457  ;;  %v495_v35 = vadd.f32 1.1920929e-07, %v479_v32  ;;  %v563_v15 = vld [vmem:[#allocation5 + $0xe8] sm:$0xff] }
 0x11a   : > { %679 = vmatmul.mubr.f32.vlgmr.msra.gmra.mxu0 %v2545_v14  ;;  %840 = vmatmul.mubr.f32.vlgmr.msra.gmra.mxu1 %v2545_v14  ;;  %1841 = vrsqrt.f32 %v494_v29  ;;  %v480_v37 = vmul.f32 0.0078125, %v458_v34  ;;  %v460_v39 = vpop.xlane.xlu1 %459 }
 0x11b   : > { %v1830_v19 = vpop.eup %1829  ;;  %1598 = vmatpush3.msra.mxu0 %v613_v44  ;;  %1669 = vmatpush3.msra.mxu1 %v613_v44  ;;  %1843 = vrsqrt.f32 %v495_v35  ;;  %v481_v44 = vmul.f32 0.0078125, %v460_v39  ;;  %v1082_v35 = vld [vmem:[%s2456_s19 + $0x8] sm:$0xff] }
 0x11c   : > { %684 = vmatprep.mubr.f32.mxu0 %v2161_v45  ;;  %845 = vmatprep.mubr.f32.mxu1 %v2161_v45  ;;  %v2552_v0 = vmul.f32 %v1830_v19, %v2466_v1  ;;  %v1832_v27 = vpop.eup %1831  ;;  %v598_v1 = vld [vmem:[#allocation5 + $0x200] sm:$0xff]  ;;  %v496_v43 = vadd.f32 1.1920929e-07, %v480_v37 }
 0x11d   : > { %1599 = vmatprep.subr.mxu0 %v608_v16  ;;  %1654 = vmatprep.subr.mxu1 %v608_v16  ;;  %v2564_v2 = vmul.f32 %v1832_v27, %v2476_v5  ;;  %v462_v47 = vpop.xlane.xlu0 %461  ;;  %v497_v48 = vadd.f32 1.1920929e-07, %v481_v44 }
 0x11e   : > { %685 = vmatmul.mubr.f32.gmra.mxu0 %v2552_v0  ;;  %846 = vmatmul.mubr.f32.gmra.mxu1 %v2552_v0  ;;  %1845 = vrsqrt.f32 %v496_v43  ;;  %v482_v52 = vmul.f32 0.0078125, %v462_v47  ;;  %v464_v54 = vpop.xlane.xlu1 %463 }
 0x11f   : > { %1600 = vmatpush3.msra.mxu0 %v608_v16  ;;  %1670 = vmatpush3.msra.mxu1 %v608_v16  ;;  %v1834_v33 = vpop.eup %1833  ;;  %1847 = vrsqrt.f32 %v497_v48  ;;  %v483_v57 = vmul.f32 0.0078125, %v464_v54  ;;  %v1083_v48 = vld [vmem:[%s2456_s19 + $0x10] sm:$0xff] }
 0x120   : > { %690 = vmatprep.mubr.f32.mxu0 %v2161_v45  ;;  %851 = vmatprep.mubr.f32.mxu1 %v2161_v45  ;;  %v2571_v5 = vmul.f32 %v1834_v33, %v2483_v8  ;;  %v1836_v38 = vpop.eup %1835  ;;  %v498_v56 = vadd.f32 1.1920929e-07, %v482_v52 }
 0x121   : > { %1601 = vmatprep.subr.mxu0 %v603_v24  ;;  %1655 = vmatprep.subr.mxu1 %v603_v24  ;;  %v2578_v8 = vmul.f32 %v1836_v38, %v2486_v9  ;;  %v466_v59 = vpop.xlane.xlu0 %465  ;;  %v499_v62 = vadd.f32 1.1920929e-07, %v483_v57 }
 0x122   : > { %691 = vmatmul.mubr.f32.gmra.mxu0 %v2557_v25  ;;  %852 = vmatmul.mubr.f32.gmra.mxu1 %v2557_v25  ;;  %1849 = vrsqrt.f32 %v498_v56  ;;  %v484_v3 = vmul.f32 0.0078125, %v466_v59  ;;  %v468_v6 = vpop.xlane.xlu1 %467 }
 0x123   : > { %1602 = vmatpush3.msra.mxu0 %v603_v24  ;;  %1671 = vmatpush3.msra.mxu1 %v603_v24  ;;  %v1838_v46 = vpop.eup %1837  ;;  %1851 = vrsqrt.f32 %v499_v62  ;;  %v485_v11 = vmul.f32 0.0078125, %v468_v6  ;;  %v1084_v62 = vld [vmem:[%s2456_s19 + $0x18] sm:$0xff] }
 0x124   : > { %696 = vmatprep.mubr.f32.mxu0 %v2161_v45  ;;  %857 = vmatprep.mubr.f32.mxu1 %v2161_v45  ;;  %v2585_v9 = vmul.f32 %v1838_v46, %v2493_v20  ;;  %v1840_v53 = vpop.eup %1839  ;;  %v500_v10 = vadd.f32 1.1920929e-07, %v484_v3 }
 0x125   : > { %1603 = vmatprep.subr.mxu0 %v598_v1  ;;  %1656 = vmatprep.subr.mxu1 %v598_v1  ;;  %v2592_v20 = vmul.f32 %v1840_v53, %v2496_v21  ;;  %v501_v13 = vadd.f32 1.1920929e-07, %v485_v11 }
 0x126   : > { %697 = vmatmul.mubr.f32.gmra.mxu0 %v2564_v2  ;;  %858 = vmatmul.mubr.f32.gmra.mxu1 %v2564_v2  ;;  %1853 = vrsqrt.f32 %v500_v10 }
 0x127   : > { %1604 = vmatpush3.msra.mxu0 %v598_v1  ;;  %1672 = vmatpush3.msra.mxu1 %v598_v1  ;;  %v1842_v58 = vpop.eup %1841  ;;  %1855 = vrsqrt.f32 %v501_v13 }
 0x128   : > { %702 = vmatprep.mubr.f32.mxu0 %v2161_v45  ;;  %863 = vmatprep.mubr.f32.mxu1 %v2161_v45  ;;  %v2599_v21 = vmul.f32 %v1842_v58, %v2503_v30  ;;  %v1844_v4 = vpop.eup %1843 }
 0x129   : > { %1605 = vmatprep.subr.mxu0 %v593_v36  ;;  %1657 = vmatprep.subr.mxu1 %v593_v36  ;;  %v2606_v30 = vmul.f32 %v1844_v4, %v2506_v31 }
 0x12a   : > { %703 = vmatmul.mubr.f32.gmra.mxu0 %v2571_v5  ;;  %864 = vmatmul.mubr.f32.gmra.mxu1 %v2571_v5 }
 0x12b   : > { %1606 = vmatpush3.msra.mxu0 %v593_v36  ;;  %1673 = vmatpush3.msra.mxu1 %v593_v36  ;;  %v1846_v12 = vpop.eup %1845 }
 0x12c   : > { %708 = vmatprep.mubr.f32.mxu0 %v2161_v45  ;;  %869 = vmatprep.mubr.f32.mxu1 %v2161_v45  ;;  %v2613_v31 = vmul.f32 %v1846_v12, %v2513_v40  ;;  %v1848_v16 = vpop.eup %1847  ;;  %v553_v40 = vld [vmem:[#allocation5 + $0x98] sm:$0xff] }
 0x12d   : > { %1607 = vmatprep.subr.mxu0 %v588_v42  ;;  %1658 = vmatprep.subr.mxu1 %v588_v42  ;;  %v529_v18 = vmul.f32 %v1848_v16, %v2516_v41  ;;  %v548_v41 = vld [vmem:[#allocation5 + $0x70] sm:$0xff]  ;;  %v1101_v16 = vld [vmem:[%s2647_s10 + $0x20] sm:$0xff] }
 0x12e   : > { %709 = vmatmul.mubr.f32.gmra.mxu0 %v2578_v8  ;;  %870 = vmatmul.mubr.f32.gmra.mxu1 %v2578_v8 }
 0x12f   : > { %1608 = vmatpush3.msra.mxu0 %v588_v42  ;;  %1674 = vmatpush3.msra.mxu1 %v588_v42  ;;  %v1850_v19 = vpop.eup %1849 }
 0x130   : > { %714 = vmatprep.mubr.f32.mxu0 %v2161_v45  ;;  %875 = vmatprep.mubr.f32.mxu1 %v2161_v45  ;;  %v530_v22 = vmul.f32 %v1850_v19, %v2523_v50  ;;  %v1852_v23 = vpop.eup %1851  ;;  %v543_v50 = vld [vmem:[#allocation5 + $0x48] sm:$0xff] }
 0x131   : > { %1609 = vmatprep.subr.mxu0 %v583_v49  ;;  %1659 = vmatprep.subr.mxu1 %v583_v49  ;;  %v531_v24 = vmul.f32 %v1852_v23, %v2526_v51  ;;  %v538_v51 = vld [vmem:[#allocation5 + $0x20] sm:$0xff] }
 0x132   : > { %715 = vmatmul.mubr.f32.gmra.mxu0 %v2585_v9  ;;  %876 = vmatmul.mubr.f32.gmra.mxu1 %v2585_v9 }
 0x133   : > { %1610 = vmatpush3.msra.mxu0 %v583_v49  ;;  %1675 = vmatpush3.msra.mxu1 %v583_v49  ;;  %v1854_v26 = vpop.eup %1853 }
 0x134   : > { %720 = vmatprep.mubr.f32.mxu0 %v2161_v45  ;;  %881 = vmatprep.mubr.f32.mxu1 %v2161_v45  ;;  %v532_v27 = vmul.f32 %v1854_v26, %v2533_v60  ;;  %v1856_v28 = vpop.eup %1855 }
 0x135   : > { %1611 = vmatprep.subr.mxu0 %v578_v55  ;;  %1660 = vmatprep.subr.mxu1 %v578_v55  ;;  %v533_v1 = vmul.f32 %v1856_v28, %v2536_v61  ;;  %v1081_v61 = vld [vmem:[%s2456_s19] sm:$0xff]  ;;  %v1102_v28 = vld [vmem:[%s2647_s10 + $0x28] sm:$0xff] }
 0x136   : > { %721 = vmatmul.mubr.f32.gmra.mxu0 %v2592_v20  ;;  %882 = vmatmul.mubr.f32.gmra.mxu1 %v2592_v20 }
 0x137   : > { %1612 = vmatpush3.msra.mxu0 %v578_v55  ;;  %1676 = vmatpush3.msra.mxu1 %v578_v55 }
 0x138   : > { %726 = vmatprep.mubr.f32.mxu0 %v2161_v45  ;;  %887 = vmatprep.mubr.f32.mxu1 %v2161_v45 }
 0x139   : > { %1613 = vmatprep.subr.mxu0 %v573_v63  ;;  %1661 = vmatprep.subr.mxu1 %v573_v63 }
 0x13a   : > { %727 = vmatmul.mubr.f32.gmra.mxu0 %v2599_v21  ;;  %888 = vmatmul.mubr.f32.gmra.mxu1 %v2599_v21 }
 0x13b   : > { %1614 = vmatpush3.msra.mxu0 %v573_v63  ;;  %1677 = vmatpush3.msra.mxu1 %v573_v63 }
 0x13c   : > { %732 = vmatprep.mubr.f32.mxu0 %v2161_v45  ;;  %893 = vmatprep.mubr.f32.mxu1 %v2161_v45 }
 0x13d   : > { %1615 = vmatprep.subr.mxu0 %v568_v7  ;;  %1662 = vmatprep.subr.mxu1 %v568_v7 }
 0x13e   : > { %733 = vmatmul.mubr.f32.gmra.mxu0 %v2606_v30  ;;  %894 = vmatmul.mubr.f32.gmra.mxu1 %v2606_v30 }
 0x13f   : > { %1616 = vmatpush3.msra.mxu0 %v568_v7  ;;  %1678 = vmatpush3.msra.mxu1 %v568_v7 }
 0x140   : > { %738 = vmatprep.mubr.f32.mxu0 %v2161_v45  ;;  %899 = vmatprep.mubr.f32.mxu1 %v2161_v45 }
 0x141   : > { %1617 = vmatprep.subr.mxu0 %v563_v15  ;;  %1663 = vmatprep.subr.mxu1 %v563_v15 }
 0x142   : > { %739 = vmatmul.mubr.f32.gmra.mxu0 %v2613_v31  ;;  %900 = vmatmul.mubr.f32.gmra.mxu1 %v2613_v31 }
 0x143   : > { %1618 = vmatpush3.msra.mxu0 %v563_v15  ;;  %1679 = vmatpush3.msra.mxu1 %v563_v15  ;;  %v1085_v15 = vld [vmem:[%s2456_s19 + $0x20] sm:$0xff] }
 0x144   : > { %744 = vmatprep.mubr.f32.mxu0 %v2161_v45  ;;  %905 = vmatprep.mubr.f32.mxu1 %v2161_v45 }
 0x145   : > { %1619 = vmatprep.subr.mxu0 %v558_v17  ;;  %1664 = vmatprep.subr.mxu1 %v558_v17 }
 0x146   : > { %745 = vmatmul.mubr.f32.gmra.mxu0 %v529_v18  ;;  %906 = vmatmul.mubr.f32.gmra.mxu1 %v529_v18 }
 0x147   : > { %1620 = vmatpush3.msra.mxu0 %v558_v17  ;;  %1680 = vmatpush3.msra.mxu1 %v558_v17 }
 0x148   : > { %750 = vmatprep.mubr.f32.mxu0 %v2161_v45  ;;  %911 = vmatprep.mubr.f32.mxu1 %v2161_v45 }
 0x149   : > { %1621 = vmatprep.subr.mxu0 %v553_v40  ;;  %1665 = vmatprep.subr.mxu1 %v553_v40 }
 0x14a   : > { %751 = vmatmul.mubr.f32.gmra.mxu0 %v530_v22  ;;  %912 = vmatmul.mubr.f32.gmra.mxu1 %v530_v22 }
 0x14b   : > { %1622 = vmatpush3.msra.mxu0 %v553_v40  ;;  %1681 = vmatpush3.msra.mxu1 %v553_v40 }
 0x14c   : > { %756 = vmatprep.mubr.f32.mxu0 %v2161_v45  ;;  %917 = vmatprep.mubr.f32.mxu1 %v2161_v45 }
 0x14d   : > { %1623 = vmatprep.subr.mxu0 %v548_v41  ;;  %1666 = vmatprep.subr.mxu1 %v548_v41 }
 0x14e   : > { %757 = vmatmul.mubr.f32.gmra.mxu0 %v531_v24  ;;  %918 = vmatmul.mubr.f32.gmra.mxu1 %v531_v24 }
 0x14f   : > { %1624 = vmatpush3.msra.mxu0 %v548_v41  ;;  %1682 = vmatpush3.msra.mxu1 %v548_v41 }
 0x150   : > { %762 = vmatprep.mubr.f32.mxu0 %v2161_v45  ;;  %923 = vmatprep.mubr.f32.mxu1 %v2161_v45 }
 0x151   : > { %1625 = vmatprep.subr.mxu0 %v543_v50  ;;  %1667 = vmatprep.subr.mxu1 %v543_v50 }
 0x152   : > { %763 = vmatmul.mubr.f32.gmra.mxu0 %v532_v27  ;;  %924 = vmatmul.mubr.f32.gmra.mxu1 %v532_v27 }
 0x153   : > { %1626 = vmatpush3.msra.mxu0 %v543_v50  ;;  %1683 = vmatpush3.msra.mxu1 %v543_v50  ;;  %v1086_v50 = vld [vmem:[%s2456_s19 + $0x28] sm:$0xff] }
 0x154   : > { %768 = vmatprep.mubr.f32.mxu0 %v2161_v45  ;;  %929 = vmatprep.mubr.f32.mxu1 %v2161_v45 }
 0x155   : > { %1627 = vmatprep.subr.mxu0 %v538_v51  ;;  %1668 = vmatprep.subr.mxu1 %v538_v51 }
 0x156   : > { %769 = vmatmul.mubr.f32.gmra.mxu0 %v533_v1  ;;  %930 = vmatmul.mubr.f32.gmra.mxu1 %v533_v1 }
 0x157   : > { %1628 = vmatpush3.msra.mxu0 %v538_v51  ;;  %1684 = vmatpush3.msra.mxu1 %v538_v51 }
 0x158   : > { %1629 = vmatprep.mubr.f32.mxu0 %v2545_v14  ;;  %1641 = vmatprep.mubr.f32.mxu1 %v2599_v21  ;;  %v1097_v14 = vld [vmem:[%s2647_s10] sm:$0xff]  ;;  %v1100_v21 = vld [vmem:[%s2647_s10 + $0x18] sm:$0xff] }
 0x15a   : > { %1630 = vmatmul.mubr.f32.vlgmr.msra.gmra.mxu0 %v2552_v0  ;;  %1642 = vmatmul.mubr.f32.vlgmr.msra.gmra.mxu1 %v2606_v30 }
 0x15b   : > { %1632 = vmatprep.mubr.f32.mxu0 %v2557_v25  ;;  %1644 = vmatprep.mubr.f32.mxu1 %v2613_v31 }
 0x15e   : > { %1633 = vmatmul.mubr.f32.gmra.mxu0 %v2564_v2  ;;  %1645 = vmatmul.mubr.f32.gmra.mxu1 %v529_v18 }
 0x15f   : > { %1635 = vmatprep.mubr.f32.mxu0 %v2571_v5  ;;  %1647 = vmatprep.mubr.f32.mxu1 %v530_v22  ;;  %v1098_v5 = vld [vmem:[%s2647_s10 + $0x8] sm:$0xff] }
 0x162   : > { %1636 = vmatmul.mubr.f32.gmra.mxu0 %v2578_v8  ;;  %1648 = vmatmul.mubr.f32.gmra.mxu1 %v531_v24 }
 0x163   : > { %1638 = vmatprep.mubr.f32.mxu0 %v2585_v9  ;;  %1650 = vmatprep.mubr.f32.mxu1 %v532_v27  ;;  %v1099_v9 = vld [vmem:[%s2647_s10 + $0x10] sm:$0xff] }
 0x166   : > { %1639 = vmatmul.mubr.f32.gmra.mxu0 %v2592_v20  ;;  %1651 = vmatmul.mubr.f32.gmra.mxu1 %v533_v1 }
 0x1da   : > { %v680_v60 = vpop.f32.mrf.mxu0  ;;  %v841_v45 = vpop.f32.mrf.mxu1 }
 0x1db   : > { %v1113_v29 = vmul.f32 %v1081_v61, %v680_v60  ;;  %v1161_v2 = vmul.f32 %v1081_v61, %v841_v45 }
 0x1dc   : > { %v682_v0 = vpop.f32.mrf.mxu0  ;;  %v843_v25 = vpop.f32.mrf.mxu1 }
 0x1dd   : > { %v1129_v32 = vmul.f32 %v1097_v14, %v682_v0  ;;  %v1177_v33 = vmul.f32 %v1097_v14, %v843_v25 }
 0x1de   : > { %v686_v34 = vpop.f32.mrf.mxu0  ;;  %v847_v36 = vpop.f32.mrf.mxu1 }
 0x1df   : > { %v1145_v37 = vadd.f32 %v1129_v32, %v1113_v29  ;;  %v1193_v38 = vadd.f32 %v1177_v33, %v1161_v2  ;;  %v1114_v43 = vmul.f32 %v1082_v35, %v686_v34  ;;  %v1162_v8 = vmul.f32 %v1082_v35, %v847_v36  ;;  %v1087_v2 = vld [vmem:[%s2456_s19 + $0x30] sm:$0xff] }
 0x1e0   : > { %v688_v39 = vpop.f32.mrf.mxu0  ;;  %v849_v42 = vpop.f32.mrf.mxu1  ;;  %v1103_v33 = vld [vmem:[%s2647_s10 + $0x30] sm:$0xff] }
 0x1e1   : > { %1209 = vst [vmem:[%s2653_s14] sm:$0xff] %v1145_v37  ;;  %1225 = vst [vmem:[%s2657_s15] sm:$0xff] %v1193_v38  ;;  %v1130_v44 = vmul.f32 %v1098_v5, %v688_v39  ;;  %v1178_v46 = vmul.f32 %v1098_v5, %v849_v42 }
 0x1e2   : > { %v692_v47 = vpop.f32.mrf.mxu0  ;;  %v853_v49 = vpop.f32.mrf.mxu1 }
 0x1e3   : > { %v1146_v52 = vadd.f32 %v1130_v44, %v1114_v43  ;;  %v1194_v53 = vadd.f32 %v1178_v46, %v1162_v8  ;;  %v1115_v56 = vmul.f32 %v1083_v48, %v692_v47  ;;  %v1163_v20 = vmul.f32 %v1083_v48, %v853_v49  ;;  %v1088_v8 = vld [vmem:[%s2456_s19 + $0x38] sm:$0xff] }
 0x1e4   : > { %v694_v54 = vpop.f32.mrf.mxu0  ;;  %v855_v55 = vpop.f32.mrf.mxu1  ;;  %v1104_v46 = vld [vmem:[%s2647_s10 + $0x38] sm:$0xff] }
 0x1e5   : > { %1210 = vst [vmem:[%s2653_s14 + $0x8] sm:$0xff] %v1146_v52  ;;  %1226 = vst [vmem:[%s2657_s15 + $0x8] sm:$0xff] %v1194_v53  ;;  %v1131_v57 = vmul.f32 %v1099_v9, %v694_v54  ;;  %v1179_v58 = vmul.f32 %v1099_v9, %v855_v55 }
 0x1e6   : > { %v698_v59 = vpop.f32.mrf.mxu0  ;;  %v859_v63 = vpop.f32.mrf.mxu1 }
 0x1e7   : > { %v1147_v3 = vadd.f32 %v1131_v57, %v1115_v56  ;;  %v1195_v4 = vadd.f32 %v1179_v58, %v1163_v20  ;;  %v1116_v10 = vmul.f32 %v1084_v62, %v698_v59  ;;  %v1164_v30 = vmul.f32 %v1084_v62, %v859_v63  ;;  %v1089_v20 = vld [vmem:[%s2456_s19 + $0x40] sm:$0xff] }
 0x1e8   : > { %v700_v6 = vpop.f32.mrf.mxu0  ;;  %v861_v7 = vpop.f32.mrf.mxu1  ;;  %v1105_v58 = vld [vmem:[%s2647_s10 + $0x40] sm:$0xff] }
 0x1e9   : > { %1211 = vst [vmem:[%s2653_s14 + $0x10] sm:$0xff] %v1147_v3  ;;  %1227 = vst [vmem:[%s2657_s15 + $0x10] sm:$0xff] %v1195_v4  ;;  %v1132_v11 = vmul.f32 %v1100_v21, %v700_v6  ;;  %v1180_v12 = vmul.f32 %v1100_v21, %v861_v7 }
 0x1ea   : > { %v704_v13 = vpop.f32.mrf.mxu0  ;;  %v865_v31 = vpop.f32.mrf.mxu1 }
 0x1eb   : > { %v1148_v17 = vadd.f32 %v1132_v11, %v1116_v10  ;;  %v1196_v18 = vadd.f32 %v1180_v12, %v1164_v30  ;;  %v1117_v22 = vmul.f32 %v1085_v15, %v704_v13  ;;  %v1165_v23 = vmul.f32 %v1085_v15, %v865_v31  ;;  %v1090_v30 = vld [vmem:[%s2456_s19 + $0x48] sm:$0xff] }
 0x1ec   : > { %v706_v19 = vpop.f32.mrf.mxu0  ;;  %v867_v40 = vpop.f32.mrf.mxu1  ;;  %v1106_v12 = vld [vmem:[%s2647_s10 + $0x48] sm:$0xff] }
 0x1ed   : > { %1212 = vst [vmem:[%s2653_s14 + $0x18] sm:$0xff] %v1148_v17  ;;  %1228 = vst [vmem:[%s2657_s15 + $0x18] sm:$0xff] %v1196_v18  ;;  %v1133_v41 = vmul.f32 %v1101_v16, %v706_v19  ;;  %v1181_v24 = vmul.f32 %v1101_v16, %v867_v40 }
 0x1ee   : > { %v710_v26 = vpop.f32.mrf.mxu0  ;;  %v871_v27 = vpop.f32.mrf.mxu1 }
 0x1ef   : > { %v1149_v51 = vadd.f32 %v1133_v41, %v1117_v22  ;;  %v1197_v1 = vadd.f32 %v1181_v24, %v1165_v23  ;;  %v1118_v45 = vmul.f32 %v1086_v50, %v710_v26  ;;  %v1166_v14 = vmul.f32 %v1086_v50, %v871_v27  ;;  %v1091_v23 = vld [vmem:[%s2456_s19 + $0x50] sm:$0xff] }
 0x1f0   : > { %v712_v60 = vpop.f32.mrf.mxu0  ;;  %v873_v61 = vpop.f32.mrf.mxu1  ;;  %v1107_v24 = vld [vmem:[%s2647_s10 + $0x50] sm:$0xff] }
 0x1f1   : > { %1213 = vst [vmem:[%s2653_s14 + $0x20] sm:$0xff] %v1149_v51  ;;  %1229 = vst [vmem:[%s2657_s15 + $0x20] sm:$0xff] %v1197_v1  ;;  %v1134_v0 = vmul.f32 %v1102_v28, %v712_v60  ;;  %v1182_v25 = vmul.f32 %v1102_v28, %v873_v61 }
 0x1f2   : > { %v716_v29 = vpop.f32.mrf.mxu0  ;;  %v877_v32 = vpop.f32.mrf.mxu1 }
 0x1f3   : > { %v1150_v34 = vadd.f32 %v1134_v0, %v1118_v45  ;;  %v1198_v35 = vadd.f32 %v1182_v25, %v1166_v14  ;;  %v1119_v37 = vmul.f32 %v1087_v2, %v716_v29  ;;  %v1167_v38 = vmul.f32 %v1087_v2, %v877_v32  ;;  %v1092_v14 = vld [vmem:[%s2456_s19 + $0x58] sm:$0xff] }
 0x1f4   : > { %v718_v36 = vpop.f32.mrf.mxu0  ;;  %v879_v5 = vpop.f32.mrf.mxu1  ;;  %v1108_v25 = vld [vmem:[%s2647_s10 + $0x58] sm:$0xff] }
 0x1f5   : > { %1214 = vst [vmem:[%s2653_s14 + $0x28] sm:$0xff] %v1150_v34  ;;  %1230 = vst [vmem:[%s2657_s15 + $0x28] sm:$0xff] %v1198_v35  ;;  %v1135_v39 = vmul.f32 %v1103_v33, %v718_v36  ;;  %v1183_v42 = vmul.f32 %v1103_v33, %v879_v5 }
 0x1f6   : > { %v722_v43 = vpop.f32.mrf.mxu0  ;;  %v883_v44 = vpop.f32.mrf.mxu1 }
 0x1f7   : > { %v1151_v47 = vadd.f32 %v1135_v39, %v1119_v37  ;;  %v1199_v48 = vadd.f32 %v1183_v42, %v1167_v38  ;;  %v1120_v52 = vmul.f32 %v1088_v8, %v722_v43  ;;  %v1168_v53 = vmul.f32 %v1088_v8, %v883_v44  ;;  %v1093_v38 = vld [vmem:[%s2456_s19 + $0x60] sm:$0xff] }
 0x1f8   : > { %v724_v49 = vpop.f32.mrf.mxu0  ;;  %v885_v9 = vpop.f32.mrf.mxu1  ;;  %v1109_v42 = vld [vmem:[%s2647_s10 + $0x60] sm:$0xff] }
 0x1f9   : > { %1215 = vst [vmem:[%s2653_s14 + $0x30] sm:$0xff] %v1151_v47  ;;  %1231 = vst [vmem:[%s2657_s15 + $0x30] sm:$0xff] %v1199_v48  ;;  %v1136_v54 = vmul.f32 %v1104_v46, %v724_v49  ;;  %v1184_v55 = vmul.f32 %v1104_v46, %v885_v9 }
 0x1fa   : > { %v728_v56 = vpop.f32.mrf.mxu0  ;;  %v889_v57 = vpop.f32.mrf.mxu1 }
 0x1fb   : > { %v1152_v59 = vadd.f32 %v1136_v54, %v1120_v52  ;;  %v1200_v62 = vadd.f32 %v1184_v55, %v1168_v53  ;;  %v1121_v3 = vmul.f32 %v1089_v20, %v728_v56  ;;  %v1169_v4 = vmul.f32 %v1089_v20, %v889_v57  ;;  %v1094_v53 = vld [vmem:[%s2456_s19 + $0x68] sm:$0xff] }
 0x1fc   : > { %v730_v63 = vpop.f32.mrf.mxu0  ;;  %v891_v21 = vpop.f32.mrf.mxu1  ;;  %v1110_v55 = vld [vmem:[%s2647_s10 + $0x68] sm:$0xff] }
 0x1fd   : > { %1216 = vst [vmem:[%s2653_s14 + $0x38] sm:$0xff] %v1152_v59  ;;  %1232 = vst [vmem:[%s2657_s15 + $0x38] sm:$0xff] %v1200_v62  ;;  %v1137_v6 = vmul.f32 %v1105_v58, %v730_v63  ;;  %v1185_v7 = vmul.f32 %v1105_v58, %v891_v21 }
 0x1fe   : > { %v734_v10 = vpop.f32.mrf.mxu0  ;;  %v895_v11 = vpop.f32.mrf.mxu1 }
 0x1ff   : > { %v1153_v13 = vadd.f32 %v1137_v6, %v1121_v3  ;;  %v1201_v15 = vadd.f32 %v1185_v7, %v1169_v4  ;;  %v1122_v17 = vmul.f32 %v1090_v30, %v734_v10  ;;  %v1170_v18 = vmul.f32 %v1090_v30, %v895_v11  ;;  %v1095_v4 = vld [vmem:[%s2456_s19 + $0x70] sm:$0xff] }
 0x200   : > { %v736_v31 = vpop.f32.mrf.mxu0  ;;  %v897_v16 = vpop.f32.mrf.mxu1  ;;  %v1111_v7 = vld [vmem:[%s2647_s10 + $0x70] sm:$0xff] }
 0x201   : > { %1217 = vst [vmem:[%s2653_s14 + $0x40] sm:$0xff] %v1153_v13  ;;  %1233 = vst [vmem:[%s2657_s15 + $0x40] sm:$0xff] %v1201_v15  ;;  %v1138_v19 = vmul.f32 %v1106_v12, %v736_v31  ;;  %v1186_v40 = vmul.f32 %v1106_v12, %v897_v16 }
 0x202   : > { %v740_v22 = vpop.f32.mrf.mxu0  ;;  %v901_v41 = vpop.f32.mrf.mxu1 }
 0x203   : > { %v1154_v26 = vadd.f32 %v1138_v19, %v1122_v17  ;;  %v1202_v50 = vadd.f32 %v1186_v40, %v1170_v18  ;;  %v1123_v51 = vmul.f32 %v1091_v23, %v740_v22  ;;  %v1171_v1 = vmul.f32 %v1091_v23, %v901_v41  ;;  %v1096_v18 = vld [vmem:[%s2456_s19 + $0x78] sm:$0xff]  ;;  %s2933_s19 = sld [smem:[#allocation26_spill]] }
 0x204   : > { %v742_v27 = vpop.f32.mrf.mxu0  ;;  %v903_v28 = vpop.f32.mrf.mxu1  ;;  %v1112_v40 = vld [vmem:[%s2647_s10 + $0x78] sm:$0xff] }
 0x205   : > { %1218 = vst [vmem:[%s2653_s14 + $0x48] sm:$0xff] %v1154_v26  ;;  %1234 = vst [vmem:[%s2657_s15 + $0x48] sm:$0xff] %v1202_v50  ;;  %v1139_v60 = vmul.f32 %v1107_v24, %v742_v27  ;;  %v1187_v61 = vmul.f32 %v1107_v24, %v903_v28 }
 0x206   : > { %v746_v45 = vpop.f32.mrf.mxu0  ;;  %v907_v0 = vpop.f32.mrf.mxu1 }
 0x207   : > { %v1155_v29 = vadd.f32 %v1139_v60, %v1123_v51  ;;  %v1203_v2 = vadd.f32 %v1187_v61, %v1171_v1  ;;  %v1124_v34 = vmul.f32 %v1092_v14, %v746_v45  ;;  %v1172_v35 = vmul.f32 %v1092_v14, %v907_v0 }
 0x208   : > { %v748_v32 = vpop.f32.mrf.mxu0  ;;  %v909_v33 = vpop.f32.mrf.mxu1 }
 0x209   : > { %1219 = vst [vmem:[%s2653_s14 + $0x50] sm:$0xff] %v1155_v29  ;;  %1235 = vst [vmem:[%s2657_s15 + $0x50] sm:$0xff] %v1203_v2  ;;  %v1140_v36 = vmul.f32 %v1108_v25, %v748_v32  ;;  %v1188_v5 = vmul.f32 %v1108_v25, %v909_v33  ;;  %s2726_s10 = scalar_lea.hbm %s2933_s19, %s2716_s28 }
 0x20a   : > { %v752_v37 = vpop.f32.mrf.mxu0  ;;  %v913_v39 = vpop.f32.mrf.mxu1 }
 0x20b   : > { %v1156_v43 = vadd.f32 %v1140_v36, %v1124_v34  ;;  %v1204_v8 = vadd.f32 %v1188_v5, %v1172_v35  ;;  %v1125_v47 = vmul.f32 %v1093_v38, %v752_v37  ;;  %v1173_v48 = vmul.f32 %v1093_v38, %v913_v39 }
 0x20c   : > { %v754_v44 = vpop.f32.mrf.mxu0  ;;  %v915_v46 = vpop.f32.mrf.mxu1 }
 0x20d   : > { %1220 = vst [vmem:[%s2653_s14 + $0x58] sm:$0xff] %v1156_v43  ;;  %1236 = vst [vmem:[%s2657_s15 + $0x58] sm:$0xff] %v1204_v8  ;;  %v1141_v49 = vmul.f32 %v1109_v42, %v754_v44  ;;  %v1189_v9 = vmul.f32 %v1109_v42, %v915_v46 }
 0x20e   : > { %v758_v52 = vpop.f32.mrf.mxu0  ;;  %v919_v54 = vpop.f32.mrf.mxu1 }
 0x20f   : > { %v1157_v56 = vadd.f32 %v1141_v49, %v1125_v47  ;;  %v1205_v20 = vadd.f32 %v1189_v9, %v1173_v48  ;;  %v1126_v59 = vmul.f32 %v1094_v53, %v758_v52  ;;  %v1174_v62 = vmul.f32 %v1094_v53, %v919_v54 }
 0x210   : > { %v760_v57 = vpop.f32.mrf.mxu0  ;;  %v921_v58 = vpop.f32.mrf.mxu1 }
 0x211   : > { %1221 = vst [vmem:[%s2653_s14 + $0x60] sm:$0xff] %v1157_v56  ;;  %1237 = vst [vmem:[%s2657_s15 + $0x60] sm:$0xff] %v1205_v20  ;;  %v1142_v63 = vmul.f32 %v1110_v55, %v760_v57  ;;  %v1190_v21 = vmul.f32 %v1110_v55, %v921_v58 }
 0x212   : > { %v764_v3 = vpop.f32.mrf.mxu0  ;;  %v925_v6 = vpop.f32.mrf.mxu1 }
 0x213   : > { %v1158_v10 = vadd.f32 %v1142_v63, %v1126_v59  ;;  %v1206_v30 = vadd.f32 %v1190_v21, %v1174_v62  ;;  %v1127_v13 = vmul.f32 %v1095_v4, %v764_v3  ;;  %v1175_v15 = vmul.f32 %v1095_v4, %v925_v6 }
 0x214   : > { %v766_v11 = vpop.f32.mrf.mxu0  ;;  %v927_v12 = vpop.f32.mrf.mxu1 }
 0x215   : > { %1222 = vst [vmem:[%s2653_s14 + $0x68] sm:$0xff] %v1158_v10  ;;  %1238 = vst [vmem:[%s2657_s15 + $0x68] sm:$0xff] %v1206_v30  ;;  %v1143_v31 = vmul.f32 %v1111_v7, %v766_v11  ;;  %v1191_v16 = vmul.f32 %v1111_v7, %v927_v12 }
 0x216   : > { %v770_v17 = vpop.f32.mrf.mxu0  ;;  %v931_v19 = vpop.f32.mrf.mxu1 }
 0x217   : > { %v1159_v22 = vadd.f32 %v1143_v31, %v1127_v13  ;;  %v1207_v23 = vadd.f32 %v1191_v16, %v1175_v15  ;;  %v1128_v26 = vmul.f32 %v1096_v18, %v770_v17  ;;  %v1176_v50 = vmul.f32 %v1096_v18, %v931_v19 }
 0x218   : > { %v772_v41 = vpop.f32.mrf.mxu0  ;;  %v933_v24 = vpop.f32.mrf.mxu1 }
 0x219   : > { %1223 = vst [vmem:[%s2653_s14 + $0x70] sm:$0xff] %v1159_v22  ;;  %1239 = vst [vmem:[%s2657_s15 + $0x70] sm:$0xff] %v1207_v23  ;;  %v1144_v27 = vmul.f32 %v1112_v40, %v772_v41  ;;  %v1192_v28 = vmul.f32 %v1112_v40, %v933_v24 }
 0x21a   : > { %v1631_v51 = vpop.f32.mrf.mxu0  ;;  %v1643_v1 = vpop.f32.mrf.mxu1 }
 0x21b   : > { %v1160_v60 = vadd.f32 %v1144_v27, %v1128_v26  ;;  %v1208_v61 = vadd.f32 %v1192_v28, %v1176_v50  ;;  %1242 = vst [vmem:[%s2729_s5 + $0x8] sm:$0xff] %v1631_v51  ;;  %1250 = vst [vmem:[%s2729_s5 + $0x48] sm:$0xff] %v1643_v1 }
 0x21c   : > { %v1002_v45 = vpop.f32.mrf.mxu0  ;;  %v1042_v14 = vpop.f32.mrf.mxu1 }
 0x21d   : > { %1224 = vst [vmem:[%s2653_s14 + $0x78] sm:$0xff] %v1160_v60  ;;  %1240 = vst [vmem:[%s2657_s15 + $0x78] sm:$0xff] %v1208_v61 }
 0x21e   : > { %1241 = vst [vmem:[%s2729_s5] sm:$0xff] %v1002_v45  ;;  %1249 = vst [vmem:[%s2729_s5 + $0x40] sm:$0xff] %v1042_v14  ;;  %v1634_v0 = vpop.f32.mrf.mxu0  ;;  %v1646_v25 = vpop.f32.mrf.mxu1 }
 0x21f   : > { %1980 = shalt.err (!%p1977_p0)
}
 0x220   : > { %s1981_s17 = scalar_lea.hbm %s2726_s10, 2048  ;;  %s1985_s15 = scalar_lea.hbm %s2933_s19, 8192 }
 0x221   : > { %p1982_p3 = scmp.ne.s32.totalorder %s2726_s10, %s1981_s17  ;;  %p1986_p7 = scmp.lt.s32.totalorder %s2726_s10, %s2933_s19 }
 0x222   : > { %p1987_p10 = scmp.lt.s32.totalorder %s1985_s15, %s1981_s17 }
 0x223   : > { %p1983_p12 = pnand %p1982_p3, %p2378_p5 }
 0x224   : > { %p1988_p2 = por %p1987_p10, %p1986_p7 }
 0x225   : > { %p1984_p13 = pneg %p1983_p12 }
 0x227   : > { %p1989_p8 = pnand %p1988_p2, %p1984_p13 }
 0x229   : > { %1992 = shalt.err (!%p1989_p8)
}
 0x22a   : > { %s2902_s0 = smov 128   ;;  %s2164_s12 = smov 8   ;;  %1244 = vst [vmem:[%s2729_s5 + $0x18] sm:$0xff] %v1634_v0  ;;  %1252 = vst [vmem:[%s2729_s5 + $0x58] sm:$0xff] %v1646_v25 }
 0x22b   : > { %1696 = dma.vmem_to_hbm [thread:$0]  (%p2378_p5), %s2733_s4, 2048, %s2726_s10, %s2749_s8, %s2902_s0, %s2902_s0, %s2164_s12  }
 0x22c   : > { %s2935_s3 = sand.u32 1, %s2127_s25   ;;  %s1993_s17 = scalar_lea.vmem %s2741_s18, 2048 }
 0x22d   : > { %s1258_s13 = scalar_lea.sflag [#allocation4], %s2935_s3  ;;  %p1994_p11 = scmp.ne.s32.totalorder %s2741_s18, %s1993_s17 }
 0x22e   : > { %s2165_s2 = smov [#allocation9]  }
 0x22f   : > { %p1995_p1 = pnand %p1994_p11, %p2378_p5  ;;  %s1997_s14 = sshll.u32 %s2165_s2, 4  ;;  %s1998_s14 = int_to_ptr.vmem [resolvable:$false] %s1997_s14 }
 0x230   : > { %s1999_s15 = scalar_lea.vmem %s1998_s14, 4096  ;;  %p2000_p9 = scmp.lt.s32.totalorder %s2741_s18, %s1998_s14 }
 0x231   : > { %p1996_p4 = pneg %p1995_p1  ;;  %p2001_p6 = scmp.lt.s32.totalorder %s1999_s15, %s1993_s17 }
 0x233   : > { %p2002_p0 = por %p2001_p6, %p2000_p9 }
 0x235   : > { %p2003_p3 = pnand %p2002_p0, %p1996_p4 }
 0x237   : > { %2006 = shalt.err (!%p2003_p3)
}
 0x238   : > { %s2007_s4 = scalar_lea.hbm %s2739_s27, 2048  ;;  %s2011_s3 = scalar_lea.hbm %s2934_s6, 8192 }
 0x239   : > { %p2008_p12 = scmp.ne.s32.totalorder %s2739_s27, %s2007_s4  ;;  %p2012_p10 = scmp.lt.s32.totalorder %s2739_s27, %s2934_s6 }
 0x23a   : > { %p2013_p2 = scmp.lt.s32.totalorder %s2011_s3, %s2007_s4 }
 0x23b   : > { %p2009_p13 = pnand %p2008_p12, %p2378_p5 }
 0x23c   : > { %p2014_p8 = por %p2013_p2, %p2012_p10 }
 0x23d   : > { %p2010_p7 = pneg %p2009_p13 }
 0x23f   : > { %p2015_p11 = pnand %p2014_p8, %p2010_p7 }
 0x241   : > { %2018 = shalt.err (!%p2015_p11)
}
 0x242   : > { %s2936_s17 = smov 128   ;;  %v1012_v29 = vpop.f32.mrf.mxu0  ;;  %v1052_v2 = vpop.f32.mrf.mxu1  ;;  %s1319_s0 = sshll.u32 %s2729_s5, 4  ;;  %s2817_s0 = int_to_ptr.vmem [resolvable:$true] %s1319_s0 }
 0x243   : > { %1695 = dma.vmem_to_hbm [thread:$0]  (%p2378_p5), %s2741_s18, 2048, %s2739_s27, %s1258_s13, %s2936_s17, %s2936_s17, %s2164_s12  }
 0x244   : > { %1243 = vst [vmem:[%s2729_s5 + $0x10] sm:$0xff] %v1012_v29  ;;  %1251 = vst [vmem:[%s2729_s5 + $0x50] sm:$0xff] %v1052_v2  ;;  %v1637_v32 = vpop.f32.mrf.mxu0  ;;  %v1649_v33 = vpop.f32.mrf.mxu1  ;;  %s2937_s13 = sld [smem:[#allocation27_spill]]  ;;  %s2019_s15 = scalar_lea.vmem %s2817_s0, 2048 }
 0x245   : > { %1246 = vst [vmem:[%s2729_s5 + $0x28] sm:$0xff] %v1637_v32  ;;  %1254 = vst [vmem:[%s2729_s5 + $0x68] sm:$0xff] %v1649_v33  ;;  %p2020_p1 = scmp.ne.s32.totalorder %s2817_s0, %s2019_s15  ;;  %s2166_s4 = smov [#allocation12]  }
 0x246   : > { %v1022_v34 = vpop.f32.mrf.mxu0  ;;  %v1062_v35 = vpop.f32.mrf.mxu1  ;;  %s2023_s10 = sshll.u32 %s2166_s4, 4  ;;  %s2024_s10 = int_to_ptr.vmem [resolvable:$false] %s2023_s10 }
 0x247   : > { %1245 = vst [vmem:[%s2729_s5 + $0x20] sm:$0xff] %v1022_v34  ;;  %1253 = vst [vmem:[%s2729_s5 + $0x60] sm:$0xff] %v1062_v35  ;;  %p2021_p4 = pnand %p2020_p1, %p2378_p5  ;;  %s2025_s11 = scalar_lea.vmem %s2024_s10, 4096 }
 0x248   : > { %v1640_v36 = vpop.f32.mrf.mxu0  ;;  %v1652_v5 = vpop.f32.mrf.mxu1  ;;  %p2026_p6 = scmp.lt.s32.totalorder %s2817_s0, %s2024_s10  ;;  %p2027_p0 = scmp.lt.s32.totalorder %s2025_s11, %s2019_s15 }
 0x249   : > { %1248 = vst [vmem:[%s2729_s5 + $0x38] sm:$0xff] %v1640_v36  ;;  %1256 = vst [vmem:[%s2729_s5 + $0x78] sm:$0xff] %v1652_v5  ;;  %p2022_p9 = pneg %p2021_p4 }
 0x24a   : > { %s2815_s14 = scalar_lea.hbm %s2937_s13, %s2716_s28  ;;  %v1032_v37 = vpop.f32.mrf.mxu0  ;;  %v1072_v38 = vpop.f32.mrf.mxu1  ;;  %p2028_p3 = por %p2027_p0, %p2026_p6 }
 0x24b   : > { %1247 = vst [vmem:[%s2729_s5 + $0x30] sm:$0xff] %v1032_v37  ;;  %1255 = vst [vmem:[%s2729_s5 + $0x70] sm:$0xff] %v1072_v38 }
 0x24c   : > { %p2029_p12 = pnand %p2028_p3, %p2022_p9 }
 0x24e   : > { %2032 = shalt.err (!%p2029_p12)
}
 0x24f   : > { %s2033_s28 = scalar_lea.hbm %s2815_s14, 2048  ;;  %s2037_s2 = scalar_lea.hbm %s2937_s13, 8192 }
 0x250   : > { %p2034_p13 = scmp.ne.s32.totalorder %s2815_s14, %s2033_s28  ;;  %p2038_p2 = scmp.lt.s32.totalorder %s2815_s14, %s2937_s13 }
 0x251   : > { %p2039_p8 = scmp.lt.s32.totalorder %s2037_s2, %s2033_s28 }
 0x252   : > { %p2035_p7 = pnand %p2034_p13, %p2378_p5 }
 0x253   : > { %p2040_p11 = por %p2039_p8, %p2038_p2 }
 0x254   : > { %p2036_p10 = pneg %p2035_p7 }
 0x256   : > { %p2041_p1 = pnand %p2040_p11, %p2036_p10 }
 0x258   : > { %2044 = shalt.err (!%p2041_p1)
}
 0x259   : > { %1697 = dma.vmem_to_hbm [thread:$0]  (%p2378_p5), %s2817_s0, 2048, %s2815_s14, %s2749_s8, %s2936_s17, %s2936_s17, %s2164_s12  }
 0x25a PF: > { %p1728_p4 = scmp.ge.s32.totalorder %s2151_s7, 2  ;;  %s1334_s15 = sand.u32 1, %s2123_s24  }
 0x25b   : > { %p2938_p9 = scmp.ne.s32.totalorder %s2922_s21, 0  ;;  %s1335_s4 = scalar_lea.sflag [#allocation4], %s1334_s15 }
 0x25d   : > { %p1716_p6 = pnand %p1728_p4, %p2938_p9 }
 0x25f   : > { %p1717_p0 = pneg %p1716_p6 }
 0x261   : > { %2102 = dma.done.wait (%p1717_p0), %s1335_s4, 2048  }
 0x262   : > { %2104 = vsyncadd (%p1717_p0), %s1335_s4, 4294965248  ;;  %s2939_s9 = sadd.s32 4294967294, %s2151_s7  }
 0x263   : > { %s1343_s10 = sand.u32 1, %s2939_s9  }
 0x264   : > { %s1344_s11 = scalar_lea.sflag [#allocation11], %s1343_s10 }
 0x265   : > { %2106 = dma.done.wait (%p1717_p0), %s1344_s11, 4096  }
 0x266   : > { %2108 = vsyncadd (%p1717_p0), %s1344_s11, 4294963200  ;;  %s27_s7 = sadd.s32 1, %s2151_s7   ;;  %s2940_s8 = sld [smem:[#allocation20_spill]] }
 0x267   : > { %p24_p5 = scmp.ge.s32.totalorder %s27_s7, 6   ;;  %s2941_s12 = sld [smem:[#allocation21_spill]] }
 0x268   : > { %s2942_s21 = smov %s2115_s22  ;;  %s2943_s22 = smov %s2119_s23 }
 0x269   : > { %s2944_s23 = smov %s2321_s16  ;;  %s2945_s24 = smov %s2127_s25 }
 0x26a   : > { %s2946_s25 = smov %s2131_s26  ;;  %s2947_s26 = smov %s2291_s20 }
 0x26b   : > { %s2948_s27 = smov %s2143_s29  ;;  %s2949_s28 = smov %s2147_s30 }
 0x26c   : > { %s2950_s29 = smov %s2940_s8  ;;  %26 = sbr.rel (!%p24_p5) target bundleno = 19 (0x13), region = 139 }
 0x26d   : > { %s2951_s30 = smov %s2941_s12 }
 0x271   :  { %1358 = vsyncpa [#allocation3], 1 }
 0x272   :  { %1360 = vsyncpa [#allocation3 + $0x1], 1 }
 0x273   :  { %1361 = vsyncpa [#allocation6], 1 }
 0x274   :  { %1362 = vsyncpa [#allocation4], 1 }
 0x275   :  { %1364 = vsyncpa [#allocation4 + $0x1], 1 }
 0x276   :  { %1365 = vsyncpa [#allocation11], 1 }
 0x277   :  { %1367 = vsyncpa [#allocation11 + $0x1], 1 }

</bundles_post_ra>
